<compile_context>
chip_gen: v7x
topology: tpu7x:2x2x1
jax: 0.10.0
libtpu: 0.0.40
codegen_flags: <defaults>
</compile_context>

<pallas_src>
import math

import jax
import jax.numpy as jnp
from jax.experimental import pallas as pl
from jax.experimental.pallas import tpu as pltpu

# ---- small, ViT-consistent synthetic config -------------------------------
B, C, H, W = 2, 3, 16, 16          # batch, channels, spatial
PATCH = 8                          # patch size
NP = (H // PATCH) * (W // PATCH)   # 4 patches
S = NP + 1                         # +CLS token -> seq len 5
D = 32                             # hidden size
NH = 2                             # attention heads
HD = D // NH                       # head dim
FF = 64                            # MLP intermediate
L = 2                              # encoder layers
NC = 2                             # classes of the sklearn linear head
LN_EPS = 1e-12                     # HF ViT layer_norm_eps
CP2 = C * PATCH * PATCH            # flattened patch length

# ---- packed parameter slab layouts -----------------------------------------
# per-layer vector slab (L, VEC_COLS) f32
_V_LN1G = 0
_V_LN1B = 1 * D
_V_BQKV = 2 * D          # fused [bq | bk | bv], width 3D
_V_BO = 5 * D
_V_LN2G = 6 * D
_V_LN2B = 7 * D
_V_B1 = 8 * D            # width FF
_V_B2 = 8 * D + FF
VEC_COLS = 9 * D + FF

# per-layer D-row weight slab (L, D, WMAT_COLS) bf16: [Wqkv | Wo | W1]
_W_QKV = 0               # width 3D
_W_O = 3 * D             # width D
_W_1 = 4 * D             # width FF
WMAT_COLS = 4 * D + FF

# head slab (3 + D, D) f32: [lnf_g; lnf_b; cls_b(padded row); cls_w(padded cols)]
_H_LNFG = 0
_H_LNFB = 1
_H_CB = 2
_H_CW = 3

OUT_LANES = 128          # lane-dense packed output: [:D]=feat, [D]=pred


def _layer_norm(x, g, b):
    mu = jnp.mean(x, axis=-1, keepdims=True)
    var = jnp.mean((x - mu) ** 2, axis=-1, keepdims=True)
    return (x - mu) * jax.lax.rsqrt(var + LN_EPS) * g + b


def vit_kernel(patches_ref, pw_ref, add_ref, vec_ref, wmat_ref, w2_ref,
               head_ref, out_ref):
    f32 = jnp.float32
    bf16 = jnp.bfloat16

    # ---- patch embedding: one bf16 MXU matmul + precomputed f32 add slab ----
    # add_ref already contains patch_bias + position table, with the CLS token
    # folded into row 0 of every batch element (the CLS "patch" row is zero).
    x = jnp.dot(patches_ref[...], pw_ref[...],
                preferred_element_type=f32) + add_ref[...]     # (B*S, D) f32

    scale = 1.0 / math.sqrt(HD)
    for l in range(L):                           # static unroll (fine at L=2)
        # --- multi-head self attention (fused QKV, per-head Wo accumulation) --
        h = _layer_norm(x, vec_ref[l, _V_LN1G:_V_LN1G + D],
                        vec_ref[l, _V_LN1B:_V_LN1B + D])        # (B*S, D) f32
        qkv = (jnp.dot(h.astype(bf16),
                       wmat_ref[l, :, _W_QKV:_W_QKV + 3 * D],
                       preferred_element_type=f32)
               + vec_ref[l, _V_BQKV:_V_BQKV + 3 * D])           # (B*S, 3D) f32

        # TODO(synk): at NH=12 / D=768 fold heads into one batched einsum with
        # 128-aligned head slices; kept as a 2-iteration static loop here since
        # single-batch-dim einsums are the proven Mosaic lowering.
        attn_out = None
        for hh in range(NH):
            q_h = qkv[:, hh * HD:(hh + 1) * HD].reshape(B, S, HD).astype(bf16)
            k_h = qkv[:, D + hh * HD:D + (hh + 1) * HD].reshape(B, S, HD).astype(bf16)
            v_h = qkv[:, 2 * D + hh * HD:2 * D + (hh + 1) * HD].reshape(B, S, HD).astype(bf16)
            sc = jnp.einsum('bqe,bke->bqk', q_h, k_h,
                            preferred_element_type=f32) * scale      # f32
            sc = sc - jnp.max(sc, axis=-1, keepdims=True)
            p = jnp.exp(sc)
            # divide -> EUP reciprocal + VPU multiply (free slot).  For tight
            # allclose feature validation vs. the HF reference use approx=False.
            p = p * pl.reciprocal(jnp.sum(p, axis=-1, keepdims=True), approx=True)
            ctx = jnp.einsum('bqk,bke->bqe', p.astype(bf16), v_h,
                             preferred_element_type=f32).reshape(B * S, HD)
            # concat(ctx_h, -1) @ Wo  ==  sum_h ctx_h @ Wo[h*HD:(h+1)*HD, :]
            contrib = jnp.dot(ctx.astype(bf16),
                              wmat_ref[l, hh * HD:(hh + 1) * HD, _W_O:_W_O + D],
                              preferred_element_type=f32)
            attn_out = contrib if attn_out is None else attn_out + contrib
        x = x + attn_out + vec_ref[l, _V_BO:_V_BO + D]

        # --- MLP block (kept 2-D) ---
        h = _layer_norm(x, vec_ref[l, _V_LN2G:_V_LN2G + D],
                        vec_ref[l, _V_LN2B:_V_LN2B + D])
        m = (jnp.dot(h.astype(bf16), wmat_ref[l, :, _W_1:_W_1 + FF],
                     preferred_element_type=f32)
             + vec_ref[l, _V_B1:_V_B1 + FF])
        # TODO(synk): HF ViT uses exact (erf) GELU; tanh approximation kept
        # because erf lowering is not guaranteed in Mosaic.
        m = jax.nn.gelu(m, approximate=True)
        x = (x + jnp.dot(m.astype(bf16), w2_ref[l], preferred_element_type=f32)
             + vec_ref[l, _V_B2:_V_B2 + D])

    # --- CLS feature (last_hidden_state[:, 0, :]) -> final LN -> linear head --
    cls_feat = x.reshape(B, S, D)[:, 0, :]                           # (B, D)
    feat = _layer_norm(cls_feat, head_ref[_H_LNFG], head_ref[_H_LNFB])
    logits = (jnp.dot(feat, head_ref[_H_CW:_H_CW + D, :],
                      preferred_element_type=jnp.float32)[:, :NC]
              + head_ref[_H_CB, 0:NC])                               # (B, NC)
    # sklearn-style predict: argmax of decision function (first max wins)
    idx = jax.lax.broadcasted_iota(jnp.int32, logits.shape, 1)
    maxv = jnp.max(logits, axis=-1, keepdims=True)
    pred = jnp.min(jnp.where(logits >= maxv, idx, NC), axis=-1)      # (B,)

    # single lane-dense 128-wide store: [:D]=features, [D]=prediction
    packed = jnp.concatenate(
        [feat, pred.astype(jnp.float32).reshape(B, 1),
         jnp.zeros((B, OUT_LANES - D - 1), jnp.float32)], axis=-1)
    out_ref[...] = packed


def init_params(key):
    ks = jax.random.split(key, 12)
    std = 0.02
    f32 = jnp.float32
    p = {
        'patch_w': jax.random.normal(ks[0], (CP2, D), f32) * std,
        'patch_b': jnp.zeros((1, D), f32),
        'cls':     jax.random.normal(ks[1], (1, D), f32) * std,
        'pos':     jax.random.normal(ks[2], (S, D), f32) * std,
        'ln1_g':   jnp.ones((L, D), f32),
        'ln1_b':   jnp.zeros((L, D), f32),
        'wq':      jax.random.normal(ks[3], (L, D, D), f32) * std,
        'bq':      jnp.zeros((L, D), f32),
        'wk':      jax.random.normal(ks[4], (L, D, D), f32) * std,
        'bk':      jnp.zeros((L, D), f32),
        'wv':      jax.random.normal(ks[5], (L, D, D), f32) * std,
        'bv':      jnp.zeros((L, D), f32),
        'wo':      jax.random.normal(ks[6], (L, D, D), f32) * std,
        'bo':      jnp.zeros((L, D), f32),
        'ln2_g':   jnp.ones((L, D), f32),
        'ln2_b':   jnp.zeros((L, D), f32),
        'w1':      jax.random.normal(ks[7], (L, D, FF), f32) * std,
        'b1':      jnp.zeros((L, FF), f32),
        'w2':      jax.random.normal(ks[8], (L, FF, D), f32) * std,
        'b2':      jnp.zeros((L, D), f32),
        'lnf_g':   jnp.ones((1, D), f32),
        'lnf_b':   jnp.zeros((1, D), f32),
        'cls_w':   jax.random.normal(ks[9], (D, NC), f32) * std,
        'cls_b':   jax.random.normal(ks[10], (1, NC), f32) * std,
    }
    return p


@jax.jit
def vit_contrastive_forward(x_nchw, params):
    f32 = jnp.float32
    bf16 = jnp.bfloat16

    # ---- layout plumbing / parameter packing in the wrapper (XLA glue) ------
    # NCHW -> non-overlapping flattened patches (== ViT stride-P conv patchify),
    # with a zero "CLS patch" row prepended -> one (B*S, CP2) bf16 slab.
    xb = x_nchw.reshape(B, C, H // PATCH, PATCH, W // PATCH, PATCH)
    patches = xb.transpose(0, 2, 4, 1, 3, 5).reshape(B, NP, CP2)
    patches = jnp.concatenate(
        [jnp.zeros((B, 1, CP2), f32), patches], axis=1)            # (B, S, CP2)
    patches2d = patches.reshape(B * S, CP2).astype(bf16)

    # CLS token + patch bias + position table folded into one additive slab.
    row0 = params['cls'] + params['pos'][0:1]                      # (1, D)
    rest = params['patch_b'] + params['pos'][1:]                   # (NP, D)
    add2d = jnp.tile(jnp.concatenate([row0, rest], axis=0), (B, 1))  # (B*S, D)

    # All per-layer vector params -> ONE (L, 9D+FF) f32 slab.
    vec_slab = jnp.concatenate(
        [params['ln1_g'], params['ln1_b'],
         params['bq'], params['bk'], params['bv'],
         params['bo'], params['ln2_g'], params['ln2_b'],
         params['b1'], params['b2']], axis=-1)

    # All per-layer D-row weight matrices -> ONE (L, D, 4D+FF) bf16 slab.
    wmat_slab = jnp.concatenate(
        [params['wq'], params['wk'], params['wv'],
         params['wo'], params['w1']], axis=-1).astype(bf16)
    w2 = params['w2'].astype(bf16)                                 # (L, FF, D)

    # Final LN + linear classifier -> ONE (3+D, D) f32 slab.
    cb_row = jnp.zeros((1, D), f32).at[0, :NC].set(params['cls_b'][0])
    cw_pad = jnp.zeros((D, D), f32).at[:, :NC].set(params['cls_w'])
    head_slab = jnp.concatenate(
        [params['lnf_g'], params['lnf_b'], cb_row, cw_pad], axis=0)

    # TODO(synk): at real sizes add grid=(L,) streamed bf16 weight BlockSpecs,
    # a leading "parallel" batch axis (v7x 2nd TC) and vmem_limit_bytes.
    out = pl.pallas_call(
        vit_kernel,
        out_shape=jax.ShapeDtypeStruct((B, OUT_LANES), f32),
        in_specs=[pl.BlockSpec(memory_space=pltpu.MemorySpace.VMEM)
                  for _ in range(7)],
        out_specs=pl.BlockSpec(memory_space=pltpu.MemorySpace.VMEM),
    )(patches2d, params['patch_w'].astype(bf16), add2d,
      vec_slab, wmat_slab, w2, head_slab)

    feats = out[:, :D]
    preds = out[:, D].astype(jnp.int32)
    return feats, preds


if __name__ == "__main__":
    key = jax.random.PRNGKey(0)
    kx, kp = jax.random.split(key)
    x = jax.random.normal(kx, (B, C, H, W), jnp.float32)   # PyTorch NCHW input
    params = init_params(kp)

    feats, preds = vit_contrastive_forward(x, params)
    jax.block_until_ready((feats, preds))

    assert feats.shape == (B, D) and preds.shape == (B,)
    assert preds.dtype == jnp.int32
    assert bool(jnp.all(jnp.isfinite(feats)))
    assert bool(jnp.all((preds >= 0) & (preds < NC)))
    print("KERNEL_OK")
</pallas_src>

<mosaic_0001>
module attributes {stable_mosaic.version = 11 : i64} {
  func.func @vit_kernel(%arg0: memref<10x192xbf16, #tpu.memory_space<vmem>>, %arg1: memref<192x32xbf16, #tpu.memory_space<vmem>>, %arg2: memref<10x32xf32, #tpu.memory_space<vmem>>, %arg3: memref<2x352xf32, #tpu.memory_space<vmem>>, %arg4: memref<2x32x192xbf16, #tpu.memory_space<vmem>>, %arg5: memref<2x64x32xbf16, #tpu.memory_space<vmem>>, %arg6: memref<35x32xf32, #tpu.memory_space<vmem>>, %arg7: memref<2x128xf32, #tpu.memory_space<vmem>>) attributes {dimension_semantics = [], scalar_prefetch = 0 : i64, scratch_operands = 0 : i64, tpu.core_type = #tpu.core_type<tc>} {
    %c0 = arith.constant 0 : index
    %c0_0 = arith.constant 0 : index
    %0 = vector.load %arg0[%c0, %c0_0] : memref<10x192xbf16, #tpu.memory_space<vmem>>, vector<10x192xbf16>
    %c0_1 = arith.constant 0 : index
    %c0_2 = arith.constant 0 : index
    %1 = vector.load %arg1[%c0_1, %c0_2] : memref<192x32xbf16, #tpu.memory_space<vmem>>, vector<192x32xbf16>
    %cst = arith.constant dense<0.000000e+00> : vector<10x32xf32>
    %2 = tpu.matmul %0, %1, %cst {dimension_numbers = #tpu.dot_dimension_numbers<[1], [0], [0], [1], [0, 0, 1, 1], [], []>} : vector<10x192xbf16>, vector<192x32xbf16>, vector<10x32xf32> -> vector<10x32xf32>
    %c0_3 = arith.constant 0 : index
    %c0_4 = arith.constant 0 : index
    %3 = vector.load %arg2[%c0_3, %c0_4] : memref<10x32xf32, #tpu.memory_space<vmem>>, vector<10x32xf32>
    %4 = arith.addf %2, %3 : vector<10x32xf32>
    %c0_5 = arith.constant 0 : index
    %c0_6 = arith.constant 0 : index
    %5 = vector.load %arg3[%c0_5, %c0_6] : memref<2x352xf32, #tpu.memory_space<vmem>>, vector<1x32xf32>
    %6 = vector.shape_cast %5 : vector<1x32xf32> to vector<32xf32>
    %c0_7 = arith.constant 0 : index
    %c32 = arith.constant 32 : index
    %7 = vector.load %arg3[%c0_7, %c32] : memref<2x352xf32, #tpu.memory_space<vmem>>, vector<1x32xf32>
    %8 = vector.shape_cast %7 : vector<1x32xf32> to vector<32xf32>
    %cst_8 = arith.constant dense<0.000000e+00> : vector<10xf32>
    %9 = vector.multi_reduction <add>, %4, %cst_8 [1] : vector<10x32xf32> to vector<10xf32>
    %10 = vector.shape_cast %9 : vector<10xf32> to vector<10x1xf32>
    %cst_9 = arith.constant 3.200000e+01 : f32
    %11 = vector.broadcast %cst_9 : f32 to vector<10x1xf32>
    %12 = arith.divf %10, %11 : vector<10x1xf32>
    %13 = vector.broadcast %12 : vector<10x1xf32> to vector<10x32xf32>
    %14 = arith.subf %4, %13 : vector<10x32xf32>
    %15 = arith.mulf %14, %14 : vector<10x32xf32>
    %cst_10 = arith.constant dense<0.000000e+00> : vector<10xf32>
    %16 = vector.multi_reduction <add>, %15, %cst_10 [1] : vector<10x32xf32> to vector<10xf32>
    %17 = vector.shape_cast %16 : vector<10xf32> to vector<10x1xf32>
    %cst_11 = arith.constant 3.200000e+01 : f32
    %18 = vector.broadcast %cst_11 : f32 to vector<10x1xf32>
    %19 = arith.divf %17, %18 : vector<10x1xf32>
    %20 = vector.broadcast %12 : vector<10x1xf32> to vector<10x32xf32>
    %21 = arith.subf %4, %20 : vector<10x32xf32>
    %cst_12 = arith.constant 9.99999996E-13 : f32
    %22 = vector.broadcast %cst_12 : f32 to vector<10x1xf32>
    %23 = arith.addf %19, %22 : vector<10x1xf32>
    %24 = math.rsqrt %23 : vector<10x1xf32>
    %25 = vector.broadcast %24 : vector<10x1xf32> to vector<10x32xf32>
    %26 = arith.mulf %21, %25 : vector<10x32xf32>
    %27 = vector.shape_cast %6 : vector<32xf32> to vector<1x32xf32>
    %28 = vector.broadcast %27 : vector<1x32xf32> to vector<10x32xf32>
    %29 = arith.mulf %26, %28 : vector<10x32xf32>
    %30 = vector.shape_cast %8 : vector<32xf32> to vector<1x32xf32>
    %31 = vector.broadcast %30 : vector<1x32xf32> to vector<10x32xf32>
    %32 = arith.addf %29, %31 : vector<10x32xf32>
    %33 = arith.truncf %32 : vector<10x32xf32> to vector<10x32xbf16>
    %c0_13 = arith.constant 0 : index
    %c0_14 = arith.constant 0 : index
    %c0_15 = arith.constant 0 : index
    %34 = vector.load %arg4[%c0_13, %c0_14, %c0_15] : memref<2x32x192xbf16, #tpu.memory_space<vmem>>, vector<1x32x96xbf16>
    %35 = vector.shape_cast %34 : vector<1x32x96xbf16> to vector<32x96xbf16>
    %cst_16 = arith.constant dense<0.000000e+00> : vector<10x96xf32>
    %36 = tpu.matmul %33, %35, %cst_16 {dimension_numbers = #tpu.dot_dimension_numbers<[1], [0], [0], [1], [0, 0, 1, 1], [], []>} : vector<10x32xbf16>, vector<32x96xbf16>, vector<10x96xf32> -> vector<10x96xf32>
    %c0_17 = arith.constant 0 : index
    %c64 = arith.constant 64 : index
    %37 = vector.load %arg3[%c0_17, %c64] : memref<2x352xf32, #tpu.memory_space<vmem>>, vector<1x96xf32>
    %38 = vector.shape_cast %37 : vector<1x96xf32> to vector<96xf32>
    %39 = vector.shape_cast %38 : vector<96xf32> to vector<1x96xf32>
    %40 = vector.broadcast %39 : vector<1x96xf32> to vector<10x96xf32>
    %41 = arith.addf %36, %40 : vector<10x96xf32>
    %42 = vector.extract_strided_slice %41 {offsets = [0, 0], sizes = [10, 16], strides = [1, 1]} : vector<10x96xf32> to vector<10x16xf32>
    %43 = vector.shape_cast %42 : vector<10x16xf32> to vector<2x5x16xf32>
    %44 = arith.truncf %43 : vector<2x5x16xf32> to vector<2x5x16xbf16>
    %45 = vector.extract_strided_slice %41 {offsets = [0, 32], sizes = [10, 16], strides = [1, 1]} : vector<10x96xf32> to vector<10x16xf32>
    %46 = vector.shape_cast %45 : vector<10x16xf32> to vector<2x5x16xf32>
    %47 = arith.truncf %46 : vector<2x5x16xf32> to vector<2x5x16xbf16>
    %48 = vector.extract_strided_slice %41 {offsets = [0, 64], sizes = [10, 16], strides = [1, 1]} : vector<10x96xf32> to vector<10x16xf32>
    %49 = vector.shape_cast %48 : vector<10x16xf32> to vector<2x5x16xf32>
    %50 = arith.truncf %49 : vector<2x5x16xf32> to vector<2x5x16xbf16>
    "tpu.trace_start"() <{level = 10 : i32, message = "bqe,bke->bqk"}> : () -> ()
    %cst_18 = arith.constant dense<0.000000e+00> : vector<2x5x5xf32>
    %51 = tpu.matmul %44, %47, %cst_18 {dimension_numbers = #tpu.dot_dimension_numbers<[2], [2], [1], [1], [0, 0, 0, 1, 1, 1], [0], [0]>} : vector<2x5x16xbf16>, vector<2x5x16xbf16>, vector<2x5x5xf32> -> vector<2x5x5xf32>
    "tpu.trace_stop"() : () -> ()
    %cst_19 = arith.constant 2.500000e-01 : f32
    %52 = vector.broadcast %cst_19 : f32 to vector<2x5x5xf32>
    %53 = arith.mulf %51, %52 : vector<2x5x5xf32>
    %cst_20 = arith.constant dense<0xFF800000> : vector<2x5xf32>
    %54 = vector.multi_reduction <maximumf>, %53, %cst_20 [2] : vector<2x5x5xf32> to vector<2x5xf32>
    %55 = vector.shape_cast %54 : vector<2x5xf32> to vector<2x5x1xf32>
    %56 = vector.broadcast %55 : vector<2x5x1xf32> to vector<2x5x5xf32>
    %57 = arith.subf %53, %56 : vector<2x5x5xf32>
    %58 = math.exp %57 : vector<2x5x5xf32>
    %cst_21 = arith.constant dense<0.000000e+00> : vector<2x5xf32>
    %59 = vector.multi_reduction <add>, %58, %cst_21 [2] : vector<2x5x5xf32> to vector<2x5xf32>
    %60 = vector.shape_cast %59 : vector<2x5xf32> to vector<2x5x1xf32>
    %61 = tpu.reciprocal %60 {approx = true} : vector<2x5x1xf32> -> vector<2x5x1xf32>
    %62 = vector.broadcast %61 : vector<2x5x1xf32> to vector<2x5x5xf32>
    %63 = arith.mulf %58, %62 : vector<2x5x5xf32>
    %64 = arith.truncf %63 : vector<2x5x5xf32> to vector<2x5x5xbf16>
    "tpu.trace_start"() <{level = 10 : i32, message = "bqk,bke->bqe"}> : () -> ()
    %cst_22 = arith.constant dense<0.000000e+00> : vector<2x5x16xf32>
    %65 = tpu.matmul %64, %50, %cst_22 {dimension_numbers = #tpu.dot_dimension_numbers<[2], [1], [1], [2], [0, 0, 0, 1, 1, 2], [0], [0]>} : vector<2x5x5xbf16>, vector<2x5x16xbf16>, vector<2x5x16xf32> -> vector<2x5x16xf32>
    "tpu.trace_stop"() : () -> ()
    %66 = vector.shape_cast %65 : vector<2x5x16xf32> to vector<10x16xf32>
    %67 = arith.truncf %66 : vector<10x16xf32> to vector<10x16xbf16>
    %c0_23 = arith.constant 0 : index
    %c0_24 = arith.constant 0 : index
    %c96 = arith.constant 96 : index
    %68 = vector.load %arg4[%c0_23, %c0_24, %c96] : memref<2x32x192xbf16, #tpu.memory_space<vmem>>, vector<1x16x32xbf16>
    %69 = vector.shape_cast %68 : vector<1x16x32xbf16> to vector<16x32xbf16>
    %cst_25 = arith.constant dense<0.000000e+00> : vector<10x32xf32>
    %70 = tpu.matmul %67, %69, %cst_25 {dimension_numbers = #tpu.dot_dimension_numbers<[1], [0], [0], [1], [0, 0, 1, 1], [], []>} : vector<10x16xbf16>, vector<16x32xbf16>, vector<10x32xf32> -> vector<10x32xf32>
    %71 = vector.extract_strided_slice %41 {offsets = [0, 16], sizes = [10, 16], strides = [1, 1]} : vector<10x96xf32> to vector<10x16xf32>
    %72 = vector.shape_cast %71 : vector<10x16xf32> to vector<2x5x16xf32>
    %73 = arith.truncf %72 : vector<2x5x16xf32> to vector<2x5x16xbf16>
    %74 = vector.extract_strided_slice %41 {offsets = [0, 48], sizes = [10, 16], strides = [1, 1]} : vector<10x96xf32> to vector<10x16xf32>
    %75 = vector.shape_cast %74 : vector<10x16xf32> to vector<2x5x16xf32>
    %76 = arith.truncf %75 : vector<2x5x16xf32> to vector<2x5x16xbf16>
    %77 = vector.extract_strided_slice %41 {offsets = [0, 80], sizes = [10, 16], strides = [1, 1]} : vector<10x96xf32> to vector<10x16xf32>
    %78 = vector.shape_cast %77 : vector<10x16xf32> to vector<2x5x16xf32>
    %79 = arith.truncf %78 : vector<2x5x16xf32> to vector<2x5x16xbf16>
    "tpu.trace_start"() <{level = 10 : i32, message = "bqe,bke->bqk"}> : () -> ()
    %cst_26 = arith.constant dense<0.000000e+00> : vector<2x5x5xf32>
    %80 = tpu.matmul %73, %76, %cst_26 {dimension_numbers = #tpu.dot_dimension_numbers<[2], [2], [1], [1], [0, 0, 0, 1, 1, 1], [0], [0]>} : vector<2x5x16xbf16>, vector<2x5x16xbf16>, vector<2x5x5xf32> -> vector<2x5x5xf32>
    "tpu.trace_stop"() : () -> ()
    %cst_27 = arith.constant 2.500000e-01 : f32
    %81 = vector.broadcast %cst_27 : f32 to vector<2x5x5xf32>
    %82 = arith.mulf %80, %81 : vector<2x5x5xf32>
    %cst_28 = arith.constant dense<0xFF800000> : vector<2x5xf32>
    %83 = vector.multi_reduction <maximumf>, %82, %cst_28 [2] : vector<2x5x5xf32> to vector<2x5xf32>
    %84 = vector.shape_cast %83 : vector<2x5xf32> to vector<2x5x1xf32>
    %85 = vector.broadcast %84 : vector<2x5x1xf32> to vector<2x5x5xf32>
    %86 = arith.subf %82, %85 : vector<2x5x5xf32>
    %87 = math.exp %86 : vector<2x5x5xf32>
    %cst_29 = arith.constant dense<0.000000e+00> : vector<2x5xf32>
    %88 = vector.multi_reduction <add>, %87, %cst_29 [2] : vector<2x5x5xf32> to vector<2x5xf32>
    %89 = vector.shape_cast %88 : vector<2x5xf32> to vector<2x5x1xf32>
    %90 = tpu.reciprocal %89 {approx = true} : vector<2x5x1xf32> -> vector<2x5x1xf32>
    %91 = vector.broadcast %90 : vector<2x5x1xf32> to vector<2x5x5xf32>
    %92 = arith.mulf %87, %91 : vector<2x5x5xf32>
    %93 = arith.truncf %92 : vector<2x5x5xf32> to vector<2x5x5xbf16>
    "tpu.trace_start"() <{level = 10 : i32, message = "bqk,bke->bqe"}> : () -> ()
    %cst_30 = arith.constant dense<0.000000e+00> : vector<2x5x16xf32>
    %94 = tpu.matmul %93, %79, %cst_30 {dimension_numbers = #tpu.dot_dimension_numbers<[2], [1], [1], [2], [0, 0, 0, 1, 1, 2], [0], [0]>} : vector<2x5x5xbf16>, vector<2x5x16xbf16>, vector<2x5x16xf32> -> vector<2x5x16xf32>
    "tpu.trace_stop"() : () -> ()
    %95 = vector.shape_cast %94 : vector<2x5x16xf32> to vector<10x16xf32>
    %96 = arith.truncf %95 : vector<10x16xf32> to vector<10x16xbf16>
    %c0_31 = arith.constant 0 : index
    %c16 = arith.constant 16 : index
    %c96_32 = arith.constant 96 : index
    %97 = vector.load %arg4[%c0_31, %c16, %c96_32] : memref<2x32x192xbf16, #tpu.memory_space<vmem>>, vector<1x16x32xbf16>
    %98 = vector.shape_cast %97 : vector<1x16x32xbf16> to vector<16x32xbf16>
    %cst_33 = arith.constant dense<0.000000e+00> : vector<10x32xf32>
    %99 = tpu.matmul %96, %98, %cst_33 {dimension_numbers = #tpu.dot_dimension_numbers<[1], [0], [0], [1], [0, 0, 1, 1], [], []>} : vector<10x16xbf16>, vector<16x32xbf16>, vector<10x32xf32> -> vector<10x32xf32>
    %100 = arith.addf %70, %99 : vector<10x32xf32>
    %101 = arith.addf %4, %100 : vector<10x32xf32>
    %c0_34 = arith.constant 0 : index
    %c160 = arith.constant 160 : index
    %102 = vector.load %arg3[%c0_34, %c160] : memref<2x352xf32, #tpu.memory_space<vmem>>, vector<1x32xf32>
    %103 = vector.shape_cast %102 : vector<1x32xf32> to vector<32xf32>
    %104 = vector.shape_cast %103 : vector<32xf32> to vector<1x32xf32>
    %105 = vector.broadcast %104 : vector<1x32xf32> to vector<10x32xf32>
    %106 = arith.addf %101, %105 : vector<10x32xf32>
    %c0_35 = arith.constant 0 : index
    %c192 = arith.constant 192 : index
    %107 = vector.load %arg3[%c0_35, %c192] : memref<2x352xf32, #tpu.memory_space<vmem>>, vector<1x32xf32>
    %108 = vector.shape_cast %107 : vector<1x32xf32> to vector<32xf32>
    %c0_36 = arith.constant 0 : index
    %c224 = arith.constant 224 : index
    %109 = vector.load %arg3[%c0_36, %c224] : memref<2x352xf32, #tpu.memory_space<vmem>>, vector<1x32xf32>
    %110 = vector.shape_cast %109 : vector<1x32xf32> to vector<32xf32>
    %cst_37 = arith.constant dense<0.000000e+00> : vector<10xf32>
    %111 = vector.multi_reduction <add>, %106, %cst_37 [1] : vector<10x32xf32> to vector<10xf32>
    %112 = vector.shape_cast %111 : vector<10xf32> to vector<10x1xf32>
    %cst_38 = arith.constant 3.200000e+01 : f32
    %113 = vector.broadcast %cst_38 : f32 to vector<10x1xf32>
    %114 = arith.divf %112, %113 : vector<10x1xf32>
    %115 = vector.broadcast %114 : vector<10x1xf32> to vector<10x32xf32>
    %116 = arith.subf %106, %115 : vector<10x32xf32>
    %117 = arith.mulf %116, %116 : vector<10x32xf32>
    %cst_39 = arith.constant dense<0.000000e+00> : vector<10xf32>
    %118 = vector.multi_reduction <add>, %117, %cst_39 [1] : vector<10x32xf32> to vector<10xf32>
    %119 = vector.shape_cast %118 : vector<10xf32> to vector<10x1xf32>
    %cst_40 = arith.constant 3.200000e+01 : f32
    %120 = vector.broadcast %cst_40 : f32 to vector<10x1xf32>
    %121 = arith.divf %119, %120 : vector<10x1xf32>
    %122 = vector.broadcast %114 : vector<10x1xf32> to vector<10x32xf32>
    %123 = arith.subf %106, %122 : vector<10x32xf32>
    %cst_41 = arith.constant 9.99999996E-13 : f32
    %124 = vector.broadcast %cst_41 : f32 to vector<10x1xf32>
    %125 = arith.addf %121, %124 : vector<10x1xf32>
    %126 = math.rsqrt %125 : vector<10x1xf32>
    %127 = vector.broadcast %126 : vector<10x1xf32> to vector<10x32xf32>
    %128 = arith.mulf %123, %127 : vector<10x32xf32>
    %129 = vector.shape_cast %108 : vector<32xf32> to vector<1x32xf32>
    %130 = vector.broadcast %129 : vector<1x32xf32> to vector<10x32xf32>
    %131 = arith.mulf %128, %130 : vector<10x32xf32>
    %132 = vector.shape_cast %110 : vector<32xf32> to vector<1x32xf32>
    %133 = vector.broadcast %132 : vector<1x32xf32> to vector<10x32xf32>
    %134 = arith.addf %131, %133 : vector<10x32xf32>
    %135 = arith.truncf %134 : vector<10x32xf32> to vector<10x32xbf16>
    %c0_42 = arith.constant 0 : index
    %c0_43 = arith.constant 0 : index
    %c128 = arith.constant 128 : index
    %136 = vector.load %arg4[%c0_42, %c0_43, %c128] : memref<2x32x192xbf16, #tpu.memory_space<vmem>>, vector<1x32x64xbf16>
    %137 = vector.shape_cast %136 : vector<1x32x64xbf16> to vector<32x64xbf16>
    %cst_44 = arith.constant dense<0.000000e+00> : vector<10x64xf32>
    %138 = tpu.matmul %135, %137, %cst_44 {dimension_numbers = #tpu.dot_dimension_numbers<[1], [0], [0], [1], [0, 0, 1, 1], [], []>} : vector<10x32xbf16>, vector<32x64xbf16>, vector<10x64xf32> -> vector<10x64xf32>
    %c0_45 = arith.constant 0 : index
    %c256 = arith.constant 256 : index
    %139 = vector.load %arg3[%c0_45, %c256] : memref<2x352xf32, #tpu.memory_space<vmem>>, vector<1x64xf32>
    %140 = vector.shape_cast %139 : vector<1x64xf32> to vector<64xf32>
    %141 = vector.shape_cast %140 : vector<64xf32> to vector<1x64xf32>
    %142 = vector.broadcast %141 : vector<1x64xf32> to vector<10x64xf32>
    %143 = arith.addf %138, %142 : vector<10x64xf32>
    %144 = arith.mulf %143, %143 : vector<10x64xf32>
    %145 = arith.mulf %143, %144 : vector<10x64xf32>
    %cst_46 = arith.constant 4.471500e-02 : f32
    %146 = vector.broadcast %cst_46 : f32 to vector<10x64xf32>
    %147 = arith.mulf %146, %145 : vector<10x64xf32>
    %148 = arith.addf %143, %147 : vector<10x64xf32>
    %cst_47 = arith.constant 0.797884583 : f32
    %149 = vector.broadcast %cst_47 : f32 to vector<10x64xf32>
    %150 = arith.mulf %149, %148 : vector<10x64xf32>
    %151 = math.tanh %150 : vector<10x64xf32>
    %cst_48 = arith.constant 1.000000e+00 : f32
    %152 = vector.broadcast %cst_48 : f32 to vector<10x64xf32>
    %153 = arith.addf %152, %151 : vector<10x64xf32>
    %cst_49 = arith.constant 5.000000e-01 : f32
    %154 = vector.broadcast %cst_49 : f32 to vector<10x64xf32>
    %155 = arith.mulf %154, %153 : vector<10x64xf32>
    %156 = arith.mulf %143, %155 : vector<10x64xf32>
    %157 = arith.truncf %156 : vector<10x64xf32> to vector<10x64xbf16>
    %c0_50 = arith.constant 0 : index
    %c0_51 = arith.constant 0 : index
    %c0_52 = arith.constant 0 : index
    %158 = vector.load %arg5[%c0_50, %c0_51, %c0_52] : memref<2x64x32xbf16, #tpu.memory_space<vmem>>, vector<1x64x32xbf16>
    %159 = vector.shape_cast %158 : vector<1x64x32xbf16> to vector<64x32xbf16>
    %cst_53 = arith.constant dense<0.000000e+00> : vector<10x32xf32>
    %160 = tpu.matmul %157, %159, %cst_53 {dimension_numbers = #tpu.dot_dimension_numbers<[1], [0], [0], [1], [0, 0, 1, 1], [], []>} : vector<10x64xbf16>, vector<64x32xbf16>, vector<10x32xf32> -> vector<10x32xf32>
    %161 = arith.addf %106, %160 : vector<10x32xf32>
    %c0_54 = arith.constant 0 : index
    %c320 = arith.constant 320 : index
    %162 = vector.load %arg3[%c0_54, %c320] : memref<2x352xf32, #tpu.memory_space<vmem>>, vector<1x32xf32>
    %163 = vector.shape_cast %162 : vector<1x32xf32> to vector<32xf32>
    %164 = vector.shape_cast %163 : vector<32xf32> to vector<1x32xf32>
    %165 = vector.broadcast %164 : vector<1x32xf32> to vector<10x32xf32>
    %166 = arith.addf %161, %165 : vector<10x32xf32>
    %c1 = arith.constant 1 : index
    %c0_55 = arith.constant 0 : index
    %167 = vector.load %arg3[%c1, %c0_55] : memref<2x352xf32, #tpu.memory_space<vmem>>, vector<1x32xf32>
    %168 = vector.shape_cast %167 : vector<1x32xf32> to vector<32xf32>
    %c1_56 = arith.constant 1 : index
    %c32_57 = arith.constant 32 : index
    %169 = vector.load %arg3[%c1_56, %c32_57] : memref<2x352xf32, #tpu.memory_space<vmem>>, vector<1x32xf32>
    %170 = vector.shape_cast %169 : vector<1x32xf32> to vector<32xf32>
    %cst_58 = arith.constant dense<0.000000e+00> : vector<10xf32>
    %171 = vector.multi_reduction <add>, %166, %cst_58 [1] : vector<10x32xf32> to vector<10xf32>
    %172 = vector.shape_cast %171 : vector<10xf32> to vector<10x1xf32>
    %cst_59 = arith.constant 3.200000e+01 : f32
    %173 = vector.broadcast %cst_59 : f32 to vector<10x1xf32>
    %174 = arith.divf %172, %173 : vector<10x1xf32>
    %175 = vector.broadcast %174 : vector<10x1xf32> to vector<10x32xf32>
    %176 = arith.subf %166, %175 : vector<10x32xf32>
    %177 = arith.mulf %176, %176 : vector<10x32xf32>
    %cst_60 = arith.constant dense<0.000000e+00> : vector<10xf32>
    %178 = vector.multi_reduction <add>, %177, %cst_60 [1] : vector<10x32xf32> to vector<10xf32>
    %179 = vector.shape_cast %178 : vector<10xf32> to vector<10x1xf32>
    %cst_61 = arith.constant 3.200000e+01 : f32
    %180 = vector.broadcast %cst_61 : f32 to vector<10x1xf32>
    %181 = arith.divf %179, %180 : vector<10x1xf32>
    %182 = vector.broadcast %174 : vector<10x1xf32> to vector<10x32xf32>
    %183 = arith.subf %166, %182 : vector<10x32xf32>
    %cst_62 = arith.constant 9.99999996E-13 : f32
    %184 = vector.broadcast %cst_62 : f32 to vector<10x1xf32>
    %185 = arith.addf %181, %184 : vector<10x1xf32>
    %186 = math.rsqrt %185 : vector<10x1xf32>
    %187 = vector.broadcast %186 : vector<10x1xf32> to vector<10x32xf32>
    %188 = arith.mulf %183, %187 : vector<10x32xf32>
    %189 = vector.shape_cast %168 : vector<32xf32> to vector<1x32xf32>
    %190 = vector.broadcast %189 : vector<1x32xf32> to vector<10x32xf32>
    %191 = arith.mulf %188, %190 : vector<10x32xf32>
    %192 = vector.shape_cast %170 : vector<32xf32> to vector<1x32xf32>
    %193 = vector.broadcast %192 : vector<1x32xf32> to vector<10x32xf32>
    %194 = arith.addf %191, %193 : vector<10x32xf32>
    %195 = arith.truncf %194 : vector<10x32xf32> to vector<10x32xbf16>
    %c1_63 = arith.constant 1 : index
    %c0_64 = arith.constant 0 : index
    %c0_65 = arith.constant 0 : index
    %196 = vector.load %arg4[%c1_63, %c0_64, %c0_65] : memref<2x32x192xbf16, #tpu.memory_space<vmem>>, vector<1x32x96xbf16>
    %197 = vector.shape_cast %196 : vector<1x32x96xbf16> to vector<32x96xbf16>
    %cst_66 = arith.constant dense<0.000000e+00> : vector<10x96xf32>
    %198 = tpu.matmul %195, %197, %cst_66 {dimension_numbers = #tpu.dot_dimension_numbers<[1], [0], [0], [1], [0, 0, 1, 1], [], []>} : vector<10x32xbf16>, vector<32x96xbf16>, vector<10x96xf32> -> vector<10x96xf32>
    %c1_67 = arith.constant 1 : index
    %c64_68 = arith.constant 64 : index
    %199 = vector.load %arg3[%c1_67, %c64_68] : memref<2x352xf32, #tpu.memory_space<vmem>>, vector<1x96xf32>
    %200 = vector.shape_cast %199 : vector<1x96xf32> to vector<96xf32>
    %201 = vector.shape_cast %200 : vector<96xf32> to vector<1x96xf32>
    %202 = vector.broadcast %201 : vector<1x96xf32> to vector<10x96xf32>
    %203 = arith.addf %198, %202 : vector<10x96xf32>
    %204 = vector.extract_strided_slice %203 {offsets = [0, 0], sizes = [10, 16], strides = [1, 1]} : vector<10x96xf32> to vector<10x16xf32>
    %205 = vector.shape_cast %204 : vector<10x16xf32> to vector<2x5x16xf32>
    %206 = arith.truncf %205 : vector<2x5x16xf32> to vector<2x5x16xbf16>
    %207 = vector.extract_strided_slice %203 {offsets = [0, 32], sizes = [10, 16], strides = [1, 1]} : vector<10x96xf32> to vector<10x16xf32>
    %208 = vector.shape_cast %207 : vector<10x16xf32> to vector<2x5x16xf32>
    %209 = arith.truncf %208 : vector<2x5x16xf32> to vector<2x5x16xbf16>
    %210 = vector.extract_strided_slice %203 {offsets = [0, 64], sizes = [10, 16], strides = [1, 1]} : vector<10x96xf32> to vector<10x16xf32>
    %211 = vector.shape_cast %210 : vector<10x16xf32> to vector<2x5x16xf32>
    %212 = arith.truncf %211 : vector<2x5x16xf32> to vector<2x5x16xbf16>
    "tpu.trace_start"() <{level = 10 : i32, message = "bqe,bke->bqk"}> : () -> ()
    %cst_69 = arith.constant dense<0.000000e+00> : vector<2x5x5xf32>
    %213 = tpu.matmul %206, %209, %cst_69 {dimension_numbers = #tpu.dot_dimension_numbers<[2], [2], [1], [1], [0, 0, 0, 1, 1, 1], [0], [0]>} : vector<2x5x16xbf16>, vector<2x5x16xbf16>, vector<2x5x5xf32> -> vector<2x5x5xf32>
    "tpu.trace_stop"() : () -> ()
    %cst_70 = arith.constant 2.500000e-01 : f32
    %214 = vector.broadcast %cst_70 : f32 to vector<2x5x5xf32>
    %215 = arith.mulf %213, %214 : vector<2x5x5xf32>
    %cst_71 = arith.constant dense<0xFF800000> : vector<2x5xf32>
    %216 = vector.multi_reduction <maximumf>, %215, %cst_71 [2] : vector<2x5x5xf32> to vector<2x5xf32>
    %217 = vector.shape_cast %216 : vector<2x5xf32> to vector<2x5x1xf32>
    %218 = vector.broadcast %217 : vector<2x5x1xf32> to vector<2x5x5xf32>
    %219 = arith.subf %215, %218 : vector<2x5x5xf32>
    %220 = math.exp %219 : vector<2x5x5xf32>
    %cst_72 = arith.constant dense<0.000000e+00> : vector<2x5xf32>
    %221 = vector.multi_reduction <add>, %220, %cst_72 [2] : vector<2x5x5xf32> to vector<2x5xf32>
    %222 = vector.shape_cast %221 : vector<2x5xf32> to vector<2x5x1xf32>
    %223 = tpu.reciprocal %222 {approx = true} : vector<2x5x1xf32> -> vector<2x5x1xf32>
    %224 = vector.broadcast %223 : vector<2x5x1xf32> to vector<2x5x5xf32>
    %225 = arith.mulf %220, %224 : vector<2x5x5xf32>
    %226 = arith.truncf %225 : vector<2x5x5xf32> to vector<2x5x5xbf16>
    "tpu.trace_start"() <{level = 10 : i32, message = "bqk,bke->bqe"}> : () -> ()
    %cst_73 = arith.constant dense<0.000000e+00> : vector<2x5x16xf32>
    %227 = tpu.matmul %226, %212, %cst_73 {dimension_numbers = #tpu.dot_dimension_numbers<[2], [1], [1], [2], [0, 0, 0, 1, 1, 2], [0], [0]>} : vector<2x5x5xbf16>, vector<2x5x16xbf16>, vector<2x5x16xf32> -> vector<2x5x16xf32>
    "tpu.trace_stop"() : () -> ()
    %228 = vector.shape_cast %227 : vector<2x5x16xf32> to vector<10x16xf32>
    %229 = arith.truncf %228 : vector<10x16xf32> to vector<10x16xbf16>
    %c1_74 = arith.constant 1 : index
    %c0_75 = arith.constant 0 : index
    %c96_76 = arith.constant 96 : index
    %230 = vector.load %arg4[%c1_74, %c0_75, %c96_76] : memref<2x32x192xbf16, #tpu.memory_space<vmem>>, vector<1x16x32xbf16>
    %231 = vector.shape_cast %230 : vector<1x16x32xbf16> to vector<16x32xbf16>
    %cst_77 = arith.constant dense<0.000000e+00> : vector<10x32xf32>
    %232 = tpu.matmul %229, %231, %cst_77 {dimension_numbers = #tpu.dot_dimension_numbers<[1], [0], [0], [1], [0, 0, 1, 1], [], []>} : vector<10x16xbf16>, vector<16x32xbf16>, vector<10x32xf32> -> vector<10x32xf32>
    %233 = vector.extract_strided_slice %203 {offsets = [0, 16], sizes = [10, 16], strides = [1, 1]} : vector<10x96xf32> to vector<10x16xf32>
    %234 = vector.shape_cast %233 : vector<10x16xf32> to vector<2x5x16xf32>
    %235 = arith.truncf %234 : vector<2x5x16xf32> to vector<2x5x16xbf16>
    %236 = vector.extract_strided_slice %203 {offsets = [0, 48], sizes = [10, 16], strides = [1, 1]} : vector<10x96xf32> to vector<10x16xf32>
    %237 = vector.shape_cast %236 : vector<10x16xf32> to vector<2x5x16xf32>
    %238 = arith.truncf %237 : vector<2x5x16xf32> to vector<2x5x16xbf16>
    %239 = vector.extract_strided_slice %203 {offsets = [0, 80], sizes = [10, 16], strides = [1, 1]} : vector<10x96xf32> to vector<10x16xf32>
    %240 = vector.shape_cast %239 : vector<10x16xf32> to vector<2x5x16xf32>
    %241 = arith.truncf %240 : vector<2x5x16xf32> to vector<2x5x16xbf16>
    "tpu.trace_start"() <{level = 10 : i32, message = "bqe,bke->bqk"}> : () -> ()
    %cst_78 = arith.constant dense<0.000000e+00> : vector<2x5x5xf32>
    %242 = tpu.matmul %235, %238, %cst_78 {dimension_numbers = #tpu.dot_dimension_numbers<[2], [2], [1], [1], [0, 0, 0, 1, 1, 1], [0], [0]>} : vector<2x5x16xbf16>, vector<2x5x16xbf16>, vector<2x5x5xf32> -> vector<2x5x5xf32>
    "tpu.trace_stop"() : () -> ()
    %cst_79 = arith.constant 2.500000e-01 : f32
    %243 = vector.broadcast %cst_79 : f32 to vector<2x5x5xf32>
    %244 = arith.mulf %242, %243 : vector<2x5x5xf32>
    %cst_80 = arith.constant dense<0xFF800000> : vector<2x5xf32>
    %245 = vector.multi_reduction <maximumf>, %244, %cst_80 [2] : vector<2x5x5xf32> to vector<2x5xf32>
    %246 = vector.shape_cast %245 : vector<2x5xf32> to vector<2x5x1xf32>
    %247 = vector.broadcast %246 : vector<2x5x1xf32> to vector<2x5x5xf32>
    %248 = arith.subf %244, %247 : vector<2x5x5xf32>
    %249 = math.exp %248 : vector<2x5x5xf32>
    %cst_81 = arith.constant dense<0.000000e+00> : vector<2x5xf32>
    %250 = vector.multi_reduction <add>, %249, %cst_81 [2] : vector<2x5x5xf32> to vector<2x5xf32>
    %251 = vector.shape_cast %250 : vector<2x5xf32> to vector<2x5x1xf32>
    %252 = tpu.reciprocal %251 {approx = true} : vector<2x5x1xf32> -> vector<2x5x1xf32>
    %253 = vector.broadcast %252 : vector<2x5x1xf32> to vector<2x5x5xf32>
    %254 = arith.mulf %249, %253 : vector<2x5x5xf32>
    %255 = arith.truncf %254 : vector<2x5x5xf32> to vector<2x5x5xbf16>
    "tpu.trace_start"() <{level = 10 : i32, message = "bqk,bke->bqe"}> : () -> ()
    %cst_82 = arith.constant dense<0.000000e+00> : vector<2x5x16xf32>
    %256 = tpu.matmul %255, %241, %cst_82 {dimension_numbers = #tpu.dot_dimension_numbers<[2], [1], [1], [2], [0, 0, 0, 1, 1, 2], [0], [0]>} : vector<2x5x5xbf16>, vector<2x5x16xbf16>, vector<2x5x16xf32> -> vector<2x5x16xf32>
    "tpu.trace_stop"() : () -> ()
    %257 = vector.shape_cast %256 : vector<2x5x16xf32> to vector<10x16xf32>
    %258 = arith.truncf %257 : vector<10x16xf32> to vector<10x16xbf16>
    %c1_83 = arith.constant 1 : index
    %c16_84 = arith.constant 16 : index
    %c96_85 = arith.constant 96 : index
    %259 = vector.load %arg4[%c1_83, %c16_84, %c96_85] : memref<2x32x192xbf16, #tpu.memory_space<vmem>>, vector<1x16x32xbf16>
    %260 = vector.shape_cast %259 : vector<1x16x32xbf16> to vector<16x32xbf16>
    %cst_86 = arith.constant dense<0.000000e+00> : vector<10x32xf32>
    %261 = tpu.matmul %258, %260, %cst_86 {dimension_numbers = #tpu.dot_dimension_numbers<[1], [0], [0], [1], [0, 0, 1, 1], [], []>} : vector<10x16xbf16>, vector<16x32xbf16>, vector<10x32xf32> -> vector<10x32xf32>
    %262 = arith.addf %232, %261 : vector<10x32xf32>
    %263 = arith.addf %166, %262 : vector<10x32xf32>
    %c1_87 = arith.constant 1 : index
    %c160_88 = arith.constant 160 : index
    %264 = vector.load %arg3[%c1_87, %c160_88] : memref<2x352xf32, #tpu.memory_space<vmem>>, vector<1x32xf32>
    %265 = vector.shape_cast %264 : vector<1x32xf32> to vector<32xf32>
    %266 = vector.shape_cast %265 : vector<32xf32> to vector<1x32xf32>
    %267 = vector.broadcast %266 : vector<1x32xf32> to vector<10x32xf32>
    %268 = arith.addf %263, %267 : vector<10x32xf32>
    %c1_89 = arith.constant 1 : index
    %c192_90 = arith.constant 192 : index
    %269 = vector.load %arg3[%c1_89, %c192_90] : memref<2x352xf32, #tpu.memory_space<vmem>>, vector<1x32xf32>
    %270 = vector.shape_cast %269 : vector<1x32xf32> to vector<32xf32>
    %c1_91 = arith.constant 1 : index
    %c224_92 = arith.constant 224 : index
    %271 = vector.load %arg3[%c1_91, %c224_92] : memref<2x352xf32, #tpu.memory_space<vmem>>, vector<1x32xf32>
    %272 = vector.shape_cast %271 : vector<1x32xf32> to vector<32xf32>
    %cst_93 = arith.constant dense<0.000000e+00> : vector<10xf32>
    %273 = vector.multi_reduction <add>, %268, %cst_93 [1] : vector<10x32xf32> to vector<10xf32>
    %274 = vector.shape_cast %273 : vector<10xf32> to vector<10x1xf32>
    %cst_94 = arith.constant 3.200000e+01 : f32
    %275 = vector.broadcast %cst_94 : f32 to vector<10x1xf32>
    %276 = arith.divf %274, %275 : vector<10x1xf32>
    %277 = vector.broadcast %276 : vector<10x1xf32> to vector<10x32xf32>
    %278 = arith.subf %268, %277 : vector<10x32xf32>
    %279 = arith.mulf %278, %278 : vector<10x32xf32>
    %cst_95 = arith.constant dense<0.000000e+00> : vector<10xf32>
    %280 = vector.multi_reduction <add>, %279, %cst_95 [1] : vector<10x32xf32> to vector<10xf32>
    %281 = vector.shape_cast %280 : vector<10xf32> to vector<10x1xf32>
    %cst_96 = arith.constant 3.200000e+01 : f32
    %282 = vector.broadcast %cst_96 : f32 to vector<10x1xf32>
    %283 = arith.divf %281, %282 : vector<10x1xf32>
    %284 = vector.broadcast %276 : vector<10x1xf32> to vector<10x32xf32>
    %285 = arith.subf %268, %284 : vector<10x32xf32>
    %cst_97 = arith.constant 9.99999996E-13 : f32
    %286 = vector.broadcast %cst_97 : f32 to vector<10x1xf32>
    %287 = arith.addf %283, %286 : vector<10x1xf32>
    %288 = math.rsqrt %287 : vector<10x1xf32>
    %289 = vector.broadcast %288 : vector<10x1xf32> to vector<10x32xf32>
    %290 = arith.mulf %285, %289 : vector<10x32xf32>
    %291 = vector.shape_cast %270 : vector<32xf32> to vector<1x32xf32>
    %292 = vector.broadcast %291 : vector<1x32xf32> to vector<10x32xf32>
    %293 = arith.mulf %290, %292 : vector<10x32xf32>
    %294 = vector.shape_cast %272 : vector<32xf32> to vector<1x32xf32>
    %295 = vector.broadcast %294 : vector<1x32xf32> to vector<10x32xf32>
    %296 = arith.addf %293, %295 : vector<10x32xf32>
    %297 = arith.truncf %296 : vector<10x32xf32> to vector<10x32xbf16>
    %c1_98 = arith.constant 1 : index
    %c0_99 = arith.constant 0 : index
    %c128_100 = arith.constant 128 : index
    %298 = vector.load %arg4[%c1_98, %c0_99, %c128_100] : memref<2x32x192xbf16, #tpu.memory_space<vmem>>, vector<1x32x64xbf16>
    %299 = vector.shape_cast %298 : vector<1x32x64xbf16> to vector<32x64xbf16>
    %cst_101 = arith.constant dense<0.000000e+00> : vector<10x64xf32>
    %300 = tpu.matmul %297, %299, %cst_101 {dimension_numbers = #tpu.dot_dimension_numbers<[1], [0], [0], [1], [0, 0, 1, 1], [], []>} : vector<10x32xbf16>, vector<32x64xbf16>, vector<10x64xf32> -> vector<10x64xf32>
    %c1_102 = arith.constant 1 : index
    %c256_103 = arith.constant 256 : index
    %301 = vector.load %arg3[%c1_102, %c256_103] : memref<2x352xf32, #tpu.memory_space<vmem>>, vector<1x64xf32>
    %302 = vector.shape_cast %301 : vector<1x64xf32> to vector<64xf32>
    %303 = vector.shape_cast %302 : vector<64xf32> to vector<1x64xf32>
    %304 = vector.broadcast %303 : vector<1x64xf32> to vector<10x64xf32>
    %305 = arith.addf %300, %304 : vector<10x64xf32>
    %306 = arith.mulf %305, %305 : vector<10x64xf32>
    %307 = arith.mulf %305, %306 : vector<10x64xf32>
    %cst_104 = arith.constant 4.471500e-02 : f32
    %308 = vector.broadcast %cst_104 : f32 to vector<10x64xf32>
    %309 = arith.mulf %308, %307 : vector<10x64xf32>
    %310 = arith.addf %305, %309 : vector<10x64xf32>
    %cst_105 = arith.constant 0.797884583 : f32
    %311 = vector.broadcast %cst_105 : f32 to vector<10x64xf32>
    %312 = arith.mulf %311, %310 : vector<10x64xf32>
    %313 = math.tanh %312 : vector<10x64xf32>
    %cst_106 = arith.constant 1.000000e+00 : f32
    %314 = vector.broadcast %cst_106 : f32 to vector<10x64xf32>
    %315 = arith.addf %314, %313 : vector<10x64xf32>
    %cst_107 = arith.constant 5.000000e-01 : f32
    %316 = vector.broadcast %cst_107 : f32 to vector<10x64xf32>
    %317 = arith.mulf %316, %315 : vector<10x64xf32>
    %318 = arith.mulf %305, %317 : vector<10x64xf32>
    %319 = arith.truncf %318 : vector<10x64xf32> to vector<10x64xbf16>
    %c1_108 = arith.constant 1 : index
    %c0_109 = arith.constant 0 : index
    %c0_110 = arith.constant 0 : index
    %320 = vector.load %arg5[%c1_108, %c0_109, %c0_110] : memref<2x64x32xbf16, #tpu.memory_space<vmem>>, vector<1x64x32xbf16>
    %321 = vector.shape_cast %320 : vector<1x64x32xbf16> to vector<64x32xbf16>
    %cst_111 = arith.constant dense<0.000000e+00> : vector<10x32xf32>
    %322 = tpu.matmul %319, %321, %cst_111 {dimension_numbers = #tpu.dot_dimension_numbers<[1], [0], [0], [1], [0, 0, 1, 1], [], []>} : vector<10x64xbf16>, vector<64x32xbf16>, vector<10x32xf32> -> vector<10x32xf32>
    %323 = arith.addf %268, %322 : vector<10x32xf32>
    %c1_112 = arith.constant 1 : index
    %c320_113 = arith.constant 320 : index
    %324 = vector.load %arg3[%c1_112, %c320_113] : memref<2x352xf32, #tpu.memory_space<vmem>>, vector<1x32xf32>
    %325 = vector.shape_cast %324 : vector<1x32xf32> to vector<32xf32>
    %326 = vector.shape_cast %325 : vector<32xf32> to vector<1x32xf32>
    %327 = vector.broadcast %326 : vector<1x32xf32> to vector<10x32xf32>
    %328 = arith.addf %323, %327 : vector<10x32xf32>
    %329 = vector.shape_cast %328 : vector<10x32xf32> to vector<2x5x32xf32>
    %330 = vector.extract_strided_slice %329 {offsets = [0, 0, 0], sizes = [2, 1, 32], strides = [1, 1, 1]} : vector<2x5x32xf32> to vector<2x1x32xf32>
    %331 = vector.shape_cast %330 : vector<2x1x32xf32> to vector<2x32xf32>
    %c0_114 = arith.constant 0 : index
    %c0_115 = arith.constant 0 : index
    %332 = vector.load %arg6[%c0_114, %c0_115] : memref<35x32xf32, #tpu.memory_space<vmem>>, vector<1x32xf32>
    %333 = vector.shape_cast %332 : vector<1x32xf32> to vector<32xf32>
    %c1_116 = arith.constant 1 : index
    %c0_117 = arith.constant 0 : index
    %334 = vector.load %arg6[%c1_116, %c0_117] : memref<35x32xf32, #tpu.memory_space<vmem>>, vector<1x32xf32>
    %335 = vector.shape_cast %334 : vector<1x32xf32> to vector<32xf32>
    %cst_118 = arith.constant dense<0.000000e+00> : vector<2xf32>
    %336 = vector.multi_reduction <add>, %331, %cst_118 [1] : vector<2x32xf32> to vector<2xf32>
    %337 = vector.shape_cast %336 : vector<2xf32> to vector<2x1xf32>
    %cst_119 = arith.constant 3.200000e+01 : f32
    %338 = vector.broadcast %cst_119 : f32 to vector<2x1xf32>
    %339 = arith.divf %337, %338 : vector<2x1xf32>
    %340 = vector.broadcast %339 : vector<2x1xf32> to vector<2x32xf32>
    %341 = arith.subf %331, %340 : vector<2x32xf32>
    %342 = arith.mulf %341, %341 : vector<2x32xf32>
    %cst_120 = arith.constant dense<0.000000e+00> : vector<2xf32>
    %343 = vector.multi_reduction <add>, %342, %cst_120 [1] : vector<2x32xf32> to vector<2xf32>
    %344 = vector.shape_cast %343 : vector<2xf32> to vector<2x1xf32>
    %cst_121 = arith.constant 3.200000e+01 : f32
    %345 = vector.broadcast %cst_121 : f32 to vector<2x1xf32>
    %346 = arith.divf %344, %345 : vector<2x1xf32>
    %347 = vector.broadcast %339 : vector<2x1xf32> to vector<2x32xf32>
    %348 = arith.subf %331, %347 : vector<2x32xf32>
    %cst_122 = arith.constant 9.99999996E-13 : f32
    %349 = vector.broadcast %cst_122 : f32 to vector<2x1xf32>
    %350 = arith.addf %346, %349 : vector<2x1xf32>
    %351 = math.rsqrt %350 : vector<2x1xf32>
    %352 = vector.broadcast %351 : vector<2x1xf32> to vector<2x32xf32>
    %353 = arith.mulf %348, %352 : vector<2x32xf32>
    %354 = vector.shape_cast %333 : vector<32xf32> to vector<1x32xf32>
    %355 = vector.broadcast %354 : vector<1x32xf32> to vector<2x32xf32>
    %356 = arith.mulf %353, %355 : vector<2x32xf32>
    %357 = vector.shape_cast %335 : vector<32xf32> to vector<1x32xf32>
    %358 = vector.broadcast %357 : vector<1x32xf32> to vector<2x32xf32>
    %359 = arith.addf %356, %358 : vector<2x32xf32>
    %c3 = arith.constant 3 : index
    %c0_123 = arith.constant 0 : index
    %360 = vector.load %arg6[%c3, %c0_123] : memref<35x32xf32, #tpu.memory_space<vmem>>, vector<32x32xf32>
    %cst_124 = arith.constant dense<0.000000e+00> : vector<2x32xf32>
    %361 = tpu.matmul %359, %360, %cst_124 {dimension_numbers = #tpu.dot_dimension_numbers<[1], [0], [0], [1], [0, 0, 1, 1], [], []>} : vector<2x32xf32>, vector<32x32xf32>, vector<2x32xf32> -> vector<2x32xf32>
    %362 = vector.extract_strided_slice %361 {offsets = [0, 0], sizes = [2, 2], strides = [1, 1]} : vector<2x32xf32> to vector<2x2xf32>
    %c2 = arith.constant 2 : index
    %c0_125 = arith.constant 0 : index
    %363 = vector.load %arg6[%c2, %c0_125] : memref<35x32xf32, #tpu.memory_space<vmem>>, vector<1x2xf32>
    %364 = vector.shape_cast %363 : vector<1x2xf32> to vector<2xf32>
    %365 = vector.shape_cast %364 : vector<2xf32> to vector<1x2xf32>
    %366 = vector.broadcast %365 : vector<1x2xf32> to vector<2x2xf32>
    %367 = arith.addf %362, %366 : vector<2x2xf32>
    %368 = tpu.iota {dimensions = array<i32: 1>} : vector<2x2xi32>
    %cst_126 = arith.constant dense<0xFF800000> : vector<2xf32>
    %369 = vector.multi_reduction <maximumf>, %367, %cst_126 [1] : vector<2x2xf32> to vector<2xf32>
    %370 = vector.shape_cast %369 : vector<2xf32> to vector<2x1xf32>
    %371 = vector.broadcast %370 : vector<2x1xf32> to vector<2x2xf32>
    %372 = arith.cmpf oge, %367, %371 : vector<2x2xf32>
    %c2_i32 = arith.constant 2 : i32
    %373 = vector.broadcast %c2_i32 : i32 to vector<2x2xi32>
    %374 = arith.select %372, %368, %373 : vector<2x2xi1>, vector<2x2xi32>
    %cst_127 = arith.constant dense<2147483647> : vector<2xi32>
    %375 = vector.multi_reduction <minsi>, %374, %cst_127 [1] : vector<2x2xi32> to vector<2xi32>
    %376 = arith.sitofp %375 : vector<2xi32> to vector<2xf32>
    %377 = vector.shape_cast %376 : vector<2xf32> to vector<2x1xf32>
    %cst_128 = arith.constant 0.000000e+00 : f32
    %378 = vector.broadcast %cst_128 : f32 to vector<2x95xf32>
    %379 = tpu.concatenate %359, %377, %378 in 1 : vector<2x32xf32>, vector<2x1xf32>, vector<2x95xf32> -> vector<2x128xf32>
    %c0_129 = arith.constant 0 : index
    %c0_130 = arith.constant 0 : index
    %380 = vector.load %arg7[%c0_129, %c0_130] : memref<2x128xf32, #tpu.memory_space<vmem>>, vector<2x128xf32>
    tpu.vector_store %arg7[%c0_129, %c0_130], %379 {strides = array<i32>} : memref<2x128xf32, #tpu.memory_space<vmem>>, vector<2x128xf32>,
    return
  }
}

</mosaic_0001>

<bundles_post_ra>
// kernel: tile.9
= control target key start
LH: loop header
LB: loop body
LE: loop exit
PB: predicated region body
PF: predicated region fallthrough
CT: control target
= control target key end

     0   :  { %vm3_vm0 = vcmask 261120   ;;  %s34_s0 = inlined_call_operand.vmem [shape: f32[2,5,32], index: 0, kind: input, shape index: {}]   ;;  %s35_s1 = inlined_call_operand.vmem [shape: f32[10,32], index: 1, kind: output, shape index: {}]  }
   0x1   :  { %v2_v0 = vld [vmem:[%s34_s0] sm:$0x1f]   ;;  %v10_v1 = vld [vmem:[%s34_s0 + $0x8] sm:$0x1f]  }
   0x2   :  { %4 = vst.msk [vmem:[%s35_s1] sm:$0x1f] %vm3_vm0, %v2_v0   ;;  %11 = vst.msk [vmem:[%s35_s1 + $0x5] sm:$0x1f] %vm3_vm0, %v10_v1  }

// kernel: vit_contrastive_forward.1
= control target key start
LH: loop header
LB: loop body
LE: loop exit
PB: predicated region body
PF: predicated region fallthrough
CT: control target
= control target key end

     0   :  { %v3643_v0 = vmov 0   ;;  %vm136_vm0 = vcmask 523264   ;;  %vm182_vm1 = vcmask 261120   ;;  %vm186_vm2 = vcmask 254976   ;;  %s3647_s16 = smov 64   ;;  %s3649_s17 = smov 80   ;;  %s4289_s1 = inlined_call_operand.vmem [shape: bf16[192,32], index: 1, kind: input, shape index: {}]   ;;  %s4290_s0 = inlined_call_operand.vmem [shape: bf16[10,192], index: 0, kind: input, shape index: {}]   ;;  %s4291_s2 = inlined_call_operand.vmem [shape: f32[10,32], index: 2, kind: input, shape index: {}]   ;;  %s4292_s3 = inlined_call_operand.vmem [shape: f32[2,352], index: 3, kind: input, shape index: {}]   ;;  %s4293_s4 = inlined_call_operand.vmem [shape: bf16[2,32,192], index: 4, kind: input, shape index: {}]   ;;  %s4294_s5 = inlined_call_operand.vmem [shape: bf16[2,64,32], index: 5, kind: input, shape index: {}]   ;;  %s4295_s6 = inlined_call_operand.vmem [shape: f32[35,32], index: 6, kind: input, shape index: {}]   ;;  %s4296_s7 = inlined_call_operand.vmem [shape: f32[2,128], index: 7, kind: output, shape index: {}]  }
   0x1   :  { %140 = vmatprep.subr.bf16.mxu0 %v3643_v0  ;;  %v3550_v1 = vld [vmem:[%s4289_s1] sm:$0xff]   ;;  %v3551_v2 = vld [vmem:[%s4289_s1 + $0x8] sm:$0xff]   ;;  %v3552_v3 = vld [vmem:[%s4289_s1 + $0x10] sm:$0xff]   ;;  %v3645_v36 = vmov 0.0   ;;  %vm3646_vm3 = vmmov 0   ;;  %v230_v39 = vlaneseq  ;;  %vm470_vm4 = vcmask 130048  }
   0x2   :  { %141 = vmatpush1.bf16.msra.mxu0 %v3550_v1  ;;  %v3553_v4 = vld [vmem:[%s4289_s1 + $0x18] sm:$0xff]   ;;  %v3564_v5 = vld [vmem:[%s4290_s0 + $0x4] ss:$8 sps:$4 sm:$0x1f]   ;;  %v3556_v8 = vld [vmem:[%s4289_s1 + $0x30] sm:$0xff]   ;;  %3345 = vmatprep.subr.bf16.mxu1 %v3645_v36  ;;  %vm568_vm5 = vcmask 36864  }
   0x3   :  { %142 = vmatprep.subr.bf16.mxu0 %v3643_v0  ;;  %v3554_v6 = vld [vmem:[%s4289_s1 + $0x20] sm:$0xff]   ;;  %3195 = vmatprep.mubr.msk.bf16.mxu0 %vm136_vm0, %v3564_v5  ;;  %v3555_v7 = vld [vmem:[%s4289_s1 + $0x28] sm:$0xff]   ;;  %v3557_v9 = vld [vmem:[%s4289_s1 + $0x38] sm:$0xff]   ;;  %v3775_v40 = vshrl.u32 %v230_v39, 7  ;;  %s3650_s18 = smov 112   ;;  %vm599_vm6 = vcmask 1041408  }
   0x4   :  { %v3558_v10 = vld [vmem:[%s4289_s1 + $0x40] sm:$0xff]   ;;  %v3559_v11 = vld [vmem:[%s4289_s1 + $0x48] sm:$0xff]   ;;  %v3560_v12 = vld [vmem:[%s4289_s1 + $0x50] sm:$0xff]   ;;  %3349 = vmatprep.mubr.msk.bf16.mxu1 %vm3646_vm3, %v3645_v36  ;;  %vm600_vm7 = vcmask 1042432   ;;  %vm595_vm8 = vcmask 39936   ;;  %s3652_s19 = smov 48  }
   0x5   :  { %v3561_v13 = vld [vmem:[%s4289_s1 + $0x58] sm:$0xff]   ;;  %v3562_v14 = vld [vmem:[%s4290_s0] ss:$8 sps:$4 sm:$0x1f]   ;;  %v3781_v42 = vsub.s32 0, %v3775_v40  ;;  %v236_v43 = vsub.s32 2, %v3775_v40 }
   0x6   :  { %143 = vmatpush1.bf16.msra.mxu0 %v3551_v2  ;;  %v53_v15 = vld [vmem:[%s4291_s2] sm:$0xff]  ;;  %v54_v17 = vld [vmem:[%s4291_s2 + $0x8] sm:$0x3]  ;;  %s3644_s2 = smov 96   ;;  %v3566_v38 = vld [vmem:[%s4293_s4 + $0x10] ss:$8 sps:$4 sm:$0xff]  }
   0x7   :  { %144 = vmatprep.subr.bf16.mxu0 %v3643_v0  ;;  %v3196_v25 = vld [vmem:[%s4292_s3] ss:$0 sm:$0xff]  ;;  %s3653_s22 = smov 32   ;;  %vm3150_vm9 = vcmask 9216   ;;  %vm3174_vm12 = vcmask 269312  }
   0x8   :  { %v3565_v37 = vld [vmem:[%s4293_s4] ss:$8 sps:$4 sm:$0xff]  }
   0x9   :  { %3346 = vmatpush3.bf16.msra.mxu1 %v3565_v37  ;;  %v228_v41 = vld [vmem:[%s4292_s3] sm:$0x5] }
   0xa   :  { %145 = vmatpush1.bf16.msra.mxu0 %v3552_v3  ;;  %3347 = vmatprep.subr.bf16.mxu1 %v3645_v36  ;;  %v233_v44 = vrot.slane %v228_v41, %v3781_v42  ;;  %v237_v45 = vrot.slane %v228_v41, %v236_v43 }
   0xb   :  { %146 = vmatprep.subr.bf16.mxu0 %v3643_v0 }
   0xc   :  { %v243_v46 = vrot.slane %v233_v44, %v3781_v42  ;;  %v247_v47 = vrot.slane %v237_v45, %v3781_v42 }
   0xd   :  { %3348 = vmatpush3.bf16.msra.mxu1 %v3566_v38 }
   0xe   :  { %147 = vmatpush1.bf16.msra.mxu0 %v3553_v4  ;;  %3353 = vmatprep.subr.bf16.mxu1 %v3645_v36 }
   0xf   :  { %148 = vmatprep.subr.bf16.mxu0 %v3643_v0 }
  0x12   :  { %149 = vmatpush1.bf16.msra.mxu0 %v3554_v6 }
  0x13   :  { %150 = vmatprep.subr.bf16.mxu0 %v3643_v0 }
  0x16   :  { %151 = vmatpush1.bf16.msra.mxu0 %v3555_v7 }
  0x17   :  { %152 = vmatprep.subr.bf16.mxu0 %v3643_v0 }
  0x1a   :  { %153 = vmatpush1.bf16.msra.mxu0 %v3556_v8 }
  0x1b   :  { %154 = vmatprep.subr.bf16.mxu0 %v3643_v0 }
  0x1e   :  { %155 = vmatpush1.bf16.msra.mxu0 %v3557_v9 }
  0x1f   :  { %156 = vmatprep.subr.bf16.mxu0 %v3643_v0 }
  0x22   :  { %157 = vmatpush1.bf16.msra.mxu0 %v3558_v10 }
  0x23   :  { %158 = vmatprep.subr.bf16.mxu0 %v3643_v0 }
  0x26   :  { %159 = vmatpush1.bf16.msra.mxu0 %v3559_v11 }
  0x27   :  { %160 = vmatprep.subr.bf16.mxu0 %v3643_v0 }
  0x2a   :  { %161 = vmatpush1.bf16.msra.mxu0 %v3560_v12 }
  0x2b   :  { %162 = vmatprep.subr.bf16.mxu0 %v3643_v0  ;;  %v3648_v0 = vmov 1966171168  }
  0x2c   :  { %v316_v1 = vunpack.c.l.s4 %v3648_v0 }
  0x2e   :  { %163 = vmatpush1.bf16.msra.mxu0 %v3561_v13  ;;  %v317_v3 = vunpack.c.0.s8 %v316_v1 }
  0x2f   :  { %3395 = vmatprep.subr.bf16.mxu0 %v3645_v36 }
  0x30   :  { %v3795_v5 = vsub.s32 %v317_v3, %v3775_v40 }
  0x31   :  { %173 = vmatmul.mubr.bf16.vlgmr.msra.gmra.mrb[0].mxu0 %v3562_v14 }
  0x32   :  { %3397 = vmatprep.mubr.msk.bf16.mxu0 %vm3646_vm3, %v3645_v36 }
 0x104   :  { %v174_v16 = vpop.f32.mrb[0].mxu0 }
 0x105   :  { %v3744_v18 = vadd.f32 %v174_v16, %v53_v15  ;;  %v176_v19 = vpop.f32.mrb[1].mxu0 }
 0x106   :  { %v177_v20 = vpop.f32.mrb[2].mxu0 }
 0x107   :  { %v3746_v21 = vadd.f32 %v177_v20, %v54_v17  ;;  %v179_v22 = vpop.f32.mrb[3].mxu0  ;;  %v183_v23 = vsel %vm182_vm1, %v3744_v18, 0.0 }
 0x108   :  { %184 = vadd.xlane.f32.xlu0 %v183_v23 }
 0x109   :  { %v187_v24 = vsel %vm186_vm2, %v3746_v21, 0.0 }
 0x10c   :  { %188 = vadd.xlane.f32.xlu0 %v187_v24 }
 0x122   :  { %218 = vrot.lane.b32.xlu0 %v3196_v25, %s3644_s2 }
 0x195   :  { %v185_v26 = vpop.xlane.xlu0 %184 }
 0x196   :  { %v191_v27 = vmul.f32 0.03125, %v185_v26 }
 0x198   :  { %v193_v28 = vsub.f32 %v3744_v18, %v191_v27 }
 0x199   :  { %v189_v29 = vpop.xlane.xlu0 %188 }
 0x19a   :  { %v192_v30 = vmul.f32 0.03125, %v189_v29  ;;  %v195_v31 = vmul.f32 %v193_v28, %v193_v28 }
 0x19c   :  { %v194_v32 = vsub.f32 %v3746_v21, %v192_v30  ;;  %v197_v33 = vsel %vm182_vm1, %v195_v31, 0.0 }
 0x19d   :  { %198 = vadd.xlane.f32.xlu1 %v197_v33  ;;  %v219_v59 = vpop.permute.xlu0 %218 }
 0x19e   :  { %v196_v34 = vmul.f32 %v194_v32, %v194_v32 }
 0x1a0   :  { %v200_v35 = vsel %vm186_vm2, %v196_v34, 0.0 }
 0x1a1   :  { %201 = vadd.xlane.f32.xlu1 %v200_v35 }
 0x1b2   :  { %262 = vrot.lane.b32.xlu1 %v243_v46, %s3647_s16 }
 0x1b6   :  { %264 = vrot.lane.b32.xlu1 %v247_v47, %s3647_s16 }
 0x22a   :  { %v199_v48 = vpop.xlane.xlu1 %198 }
 0x22b   :  { %v203_v49 = vmul.f32 0.03125, %v199_v48 }
 0x22d   :  { %v205_v50 = vadd.f32 1e-12, %v203_v49 }
 0x22e   :  { %v202_v51 = vpop.xlane.xlu1 %201 }
 0x22f   :  { %3585 = vrsqrt.f32 %v205_v50  ;;  %v204_v52 = vmul.f32 0.03125, %v202_v51 }
 0x231   :  { %v206_v53 = vadd.f32 1e-12, %v204_v52 }
 0x232   :  { %v263_v2 = vpop.permute.xlu1 %262 }
 0x233   :  { %3587 = vrsqrt.f32 %v206_v53 }
 0x236   :  { %v265_v4 = vpop.permute.xlu1 %264 }
 0x237   :  { %v266_v6 = vsel %vm136_vm0, %v263_v2, %v265_v4 }
 0x239   :  { %v3586_v54 = vpop.eup %3585 }
 0x23a   :  { %v209_v55 = vmul.f32 %v3586_v54, %v193_v28 }
 0x23c   :  { %v215_v58 = vmul.f32 %v3196_v25, %v209_v55 }
 0x23d   :  { %v3588_v56 = vpop.eup %3587 }
 0x23e   :  { %v210_v57 = vmul.f32 %v3588_v56, %v194_v32  ;;  %v221_v61 = vadd.f32 %v219_v59, %v215_v58 }
 0x240   :  { %v216_v60 = vmul.f32 %v3196_v25, %v210_v57 }
 0x242   :  { %v222_v62 = vadd.f32 %v219_v59, %v216_v60 }
 0x244   :  { %v223_v63 = vpack.c.bf16 %v222_v62, %v221_v61 }
 0x246   :  { %3350 = vmatmul.mubr.msk.bf16.vlgmr.msra.gmra.mrb[0].mxu1 %vm182_vm1, %v223_v63 }
 0x247   :  { %3355 = vmatprep.mubr.msk.bf16.mxu1 %vm3646_vm3, %v3645_v36 }
 0x319   :  { %v305_v7 = vpop.f32.mrb[0].mxu1 }
 0x31a   :  { %v306_v8 = vadd.f32 %v305_v7, %v266_v6  ;;  %v3351_v9 = vpop.f32.mrb[1].mxu1 }
 0x31b   :  { %v308_v10 = vpop.f32.mrb[2].mxu1 }
 0x31c   :  { %v314_v11 = vcombine.high %v306_v8, %v306_v8  ;;  %v321_v12 = vrot.slane %v306_v8, %v3795_v5  ;;  %v309_v13 = vadd.f32 %v308_v10, %v266_v6  ;;  %v3352_v14 = vpop.f32.mrb[3].mxu1  ;;  %v3651_v8 = vmov 65535  }
 0x31d   :  { %v601_v9 = vsel %vm599_vm6, 4294967295, %v3651_v8 }
 0x31e   :  { %v328_v15 = vrot.slane %v314_v11, %v3795_v5  ;;  %v329_v16 = vcombine.high %v321_v12, %v321_v12  ;;  %v369_v17 = vrot.slane %v309_v13, %v3795_v5  ;;  %v337_v19 = vrot.slane %v321_v12, %v3795_v5 }
 0x31f   :  { %v3847_v12 = vsel %vm600_vm7, %v601_v9, 0 }
 0x320   :  { %v330_v20 = vcombine.high %v328_v15, %v328_v15  ;;  %v344_v22 = vrot.slane %v328_v15, %v3795_v5  ;;  %v351_v23 = vrot.slane %v329_v16, %v3795_v5  ;;  %v370_v24 = vcombine.high %v369_v17, %v369_v17 }
 0x321   :  { %v377_v30 = vrot.slane %v369_v17, %v3795_v5 }
 0x322   :  { %v358_v25 = vrot.slane %v330_v20, %v3795_v5  ;;  %v360_v26 = vcombine.high %v344_v22, %v344_v22  ;;  %v385_v27 = vcombine.low %v337_v19, %v351_v23  ;;  %v3200_v28 = vcombine.high %v337_v19, %v351_v23 }
 0x323   :  { %v407_v29 = vrot.slane %v344_v22, %v3795_v5  ;;  %v384_v31 = vrot.slane %v370_v24, %v3795_v5 }
 0x324   :  { %v393_v32 = vrot.slane %v385_v27, %v3795_v5  ;;  %v400_v33 = vrot.slane %v3200_v28, %v3795_v5  ;;  %v424_v34 = vcombine.low %v358_v25, %v360_v26  ;;  %v362_v35 = vcombine.high %v358_v25, %v358_v25 }
 0x325   :  { %v422_v41 = vrot.slane %v407_v29, %v3795_v5  ;;  %v446_v47 = vrot.slane %v384_v31, %v3795_v5 }
 0x326   :  { %v408_v37 = vcombine.low %v393_v32, %v400_v33  ;;  %v425_v38 = vcombine.low %v362_v35, %v377_v30  ;;  %v432_v45 = vrot.slane %v424_v34, %v3795_v5 }
 0x327   :  { %v461_v52 = vrot.slane %v446_v47, %v3795_v5 }
 0x328   :  { %v415_v44 = vrot.slane %v408_v37, %v3795_v5  ;;  %v439_v46 = vrot.slane %v425_v38, %v3795_v5 }
 0x32a   :  { %v423_v48 = vcombine.low %v415_v44, %v422_v41  ;;  %v447_v49 = vcombine.low %v432_v45, %v439_v46 }
 0x32c   :  { %v3815_v50 = vpack.c.bf16 %v423_v48, %v423_v48  ;;  %v454_v51 = vrot.slane %v447_v49, %v3795_v5 }
 0x32e   :  { %v462_v53 = vcombine.low %v454_v51, %v461_v52  ;;  %468 = vrot.lane.b32.xlu1 %v3815_v50, %s3644_s2 }
 0x330   :  { %v3821_v54 = vpack.c.bf16 %v462_v53, %v462_v53 }
 0x332   :  { %518 = vrot.lane.b32.xlu0 %v3821_v54, %s3644_s2 }
 0x3a0   :  { %v469_v55 = vpop.permute.xlu1 %468 }
 0x3a1   :  { %v475_v56 = vsel %vm470_vm4, %v469_v55, 0 }
 0x3a2   :  { %3354 = vmatpush3.bf16.xpose.msra.mxu1 %v475_v56 }
 0x3a3   :  { %3359 = vmatprep.subr.bf16.mxu1 %v3645_v36 }
 0x3a4   :  { %v519_v57 = vpop.permute.xlu0 %518 }
 0x3a5   :  { %v524_v58 = vsel %vm470_vm4, %v519_v57, 0 }
 0x3a9   :  { %3356 = vmatmul.mubr.msk.bf16.vlgmr.msra.gmra.mrb[4].mxu1 %vm470_vm4, %v3815_v50 }
 0x3aa   :  { %3360 = vmatpush3.bf16.xpose.msra.mxu1 %v524_v58  ;;  %3361 = vmatprep.mubr.msk.bf16.mxu1 %vm3646_vm3, %v3645_v36 }
 0x3ab   :  { %3365 = vmatprep.subr.bf16.mxu1 %v3645_v36 }
 0x3b1   :  { %3362 = vmatmul.mubr.msk.bf16.vlgmr.msra.gmra.mrb[8].mxu1 %vm470_vm4, %v3821_v54 }
 0x3b2   :  { %3367 = vmatprep.mubr.msk.bf16.mxu1 %vm3646_vm3, %v3645_v36 }
 0x47c   :  { %v511_v59 = vpop.f32.mrb[4].mxu1 }
 0x47d   :  { %v566_v60 = vmul.f32 0.25, %v511_v59  ;;  %v3357_v61 = vpop.f32.mrb[5].mxu1 }
 0x47e   :  { %v514_v62 = vpop.f32.mrb[6].mxu1 }
 0x47f   :  { %v3358_v63 = vpop.f32.mrb[7].mxu1  ;;  %v569_v0 = vsel %vm568_vm5, %v566_v60, -inf }
 0x480   :  { %570 = vmax.xlane.f32.xlu1 %v569_v0 }
 0x484   :  { %v560_v1 = vpop.f32.mrb[8].mxu1 }
 0x485   :  { %v567_v2 = vmul.f32 0.25, %v560_v1  ;;  %v3363_v3 = vpop.f32.mrb[9].mxu1 }
 0x486   :  { %v563_v4 = vpop.f32.mrb[10].mxu1 }
 0x487   :  { %v3364_v6 = vpop.f32.mrb[11].mxu1  ;;  %v572_v7 = vsel %vm568_vm5, %v567_v2, -inf }
 0x488   :  { %573 = vmax.xlane.f32.xlu0 %v572_v7 }
 0x491   :  { %593 = vrot.lane.b32.xlu1 %v3815_v50, %s3647_s16 }
 0x495   :  { %845 = vrot.lane.b32.xlu1 %v3815_v50, %s3649_s17 }
 0x499   :  { %843 = vrot.lane.b32.xlu1 %v3815_v50, %s3650_s18 }
 0x49d   :  { %895 = vrot.lane.b32.xlu1 %v3821_v54, %s3649_s17 }
 0x50d   :  { %v571_v10 = vpop.xlane.xlu1 %570 }
 0x50e   :  { %v575_v11 = vsub.f32 %v566_v60, %v571_v10 }
 0x510   :  { %v577_v13 = vmul.f32 1.442695, %v575_v11 }
 0x511   :  { %v594_v14 = vpop.permute.xlu1 %593 }
 0x512   :  { %3589 = vpow2.f32 %v577_v13  ;;  %v604_v15 = vand.u32 %v3847_v12, %v594_v14 }
 0x514   :  { %3366 = vmatpush3.bf16.msra.mxu1 %v604_v15 }
 0x515   :  { %v574_v16 = vpop.xlane.xlu0 %573  ;;  %3371 = vmatprep.subr.bf16.mxu1 %v3645_v36  ;;  %v846_v32 = vpop.permute.xlu1 %845 }
 0x516   :  { %v576_v17 = vsub.f32 %v567_v2, %v574_v16  ;;  %v851_v38 = vsel %vm470_vm4, %v846_v32, 0 }
 0x518   :  { %v579_v19 = vmul.f32 1.442695, %v576_v17 }
 0x519   :  { %v844_v37 = vpop.permute.xlu1 %843 }
 0x51a   :  { %3591 = vpow2.f32 %v579_v19 }
 0x51c   :  { %v3590_v20 = vpop.eup %3589 }
 0x51d   :  { %v581_v22 = vsel %vm568_vm5, %v3590_v20, 0.0  ;;  %v896_v41 = vpop.permute.xlu1 %895 }
 0x51e   :  { %582 = vadd.xlane.f32.xlu0 %v581_v22  ;;  %v901_v44 = vsel %vm470_vm4, %v896_v41, 0 }
 0x524   :  { %v3592_v23 = vpop.eup %3591 }
 0x525   :  { %v584_v24 = vsel %vm568_vm5, %v3592_v23, 0.0 }
 0x526   :  { %585 = vadd.xlane.f32.xlu0 %v584_v24 }
 0x53c   :  { %646 = vrot.lane.b32.xlu0 %v3821_v54, %s3647_s16 }
 0x540   :  { %893 = vrot.lane.b32.xlu0 %v3821_v54, %s3650_s18 }
 0x5ab   :  { %v583_v25 = vpop.xlane.xlu0 %582 }
 0x5ac   :  { %3593 = vrcp.f32 %v583_v25 }
 0x5b3   :  { %v586_v26 = vpop.xlane.xlu0 %585 }
 0x5b4   :  { %3595 = vrcp.f32 %v586_v26 }
 0x5b6   :  { %v3594_v27 = vpop.eup %3593 }
 0x5b7   :  { %v589_v28 = vmul.f32 %v3594_v27, %v3590_v20  ;;  %v647_v29 = vpop.permute.xlu0 %646 }
 0x5b8   :  { %v652_v30 = vand.u32 %v647_v29, %v3847_v12 }
 0x5b9   :  { %v591_v31 = vpack.c.bf16 %v589_v28, %v589_v28 }
 0x5bb   :  { %3368 = vmatmul.mubr.msk.bf16.vlgmr.msra.gmra.mrb[12].mxu1 %vm595_vm8, %v591_v31  ;;  %v894_v45 = vpop.permute.xlu0 %893 }
 0x5bc   :  { %3372 = vmatpush3.bf16.msra.mxu1 %v652_v30  ;;  %3373 = vmatprep.mubr.msk.bf16.mxu1 %vm3646_vm3, %v3645_v36 }
 0x5bd   :  { %3377 = vmatprep.subr.bf16.mxu1 %v3645_v36 }
 0x5be   :  { %v3596_v33 = vpop.eup %3595 }
 0x5bf   :  { %v590_v34 = vmul.f32 %v3596_v33, %v3592_v23 }
 0x5c1   :  { %v592_v35 = vpack.c.bf16 %v590_v34, %v590_v34 }
 0x5c3   :  { %3374 = vmatmul.mubr.msk.bf16.vlgmr.msra.gmra.mrb[16].mxu1 %vm595_vm8, %v592_v35 }
 0x5c4   :  { %3379 = vmatprep.mubr.msk.bf16.mxu1 %vm3646_vm3, %v3645_v36 }
 0x5c5   :  { %3378 = vmatpush3.bf16.xpose.msra.mxu1 %v851_v38 }
 0x5c6   :  { %3383 = vmatprep.subr.bf16.mxu1 %v3645_v36 }
 0x5cc   :  { %3380 = vmatmul.mubr.msk.bf16.vlgmr.msra.gmra.mrb[20].mxu1 %vm470_vm4, %v844_v37 }
 0x5cd   :  { %3384 = vmatpush3.bf16.xpose.msra.mxu1 %v901_v44  ;;  %3385 = vmatprep.mubr.msk.bf16.mxu1 %vm3646_vm3, %v3645_v36 }
 0x5ce   :  { %3389 = vmatprep.subr.bf16.mxu1 %v3645_v36 }
 0x5d4   :  { %3386 = vmatmul.mubr.msk.bf16.vlgmr.msra.gmra.mrb[24].mxu1 %vm470_vm4, %v894_v45 }
 0x5d5   :  { %3391 = vmatprep.mubr.msk.bf16.mxu1 %vm3646_vm3, %v3645_v36 }
 0x68e   :  { %v640_v46 = vpop.f32.mrb[12].mxu1 }
 0x68f   :  { %v703_v47 = vrot.slane %v640_v46, %v3795_v5  ;;  %v3369_v48 = vpop.f32.mrb[13].mxu1  ;;  %v696_v53 = vcombine.high %v640_v46, %v640_v46  ;;  %v3567_v46 = vld [vmem:[%s4293_s4 + $0x10] ss:$8 sps:$4 sm:$0xff]  }
 0x690   :  { %v643_v49 = vpop.f32.mrb[14].mxu1 }
 0x691   :  { %v711_v51 = vcombine.high %v703_v47, %v703_v47  ;;  %v3370_v52 = vpop.f32.mrb[15].mxu1  ;;  %v718_v56 = vrot.slane %v703_v47, %v3795_v5  ;;  %v710_v57 = vrot.slane %v696_v53, %v3795_v5  ;;  %v3568_v47 = vld [vmem:[%s4293_s4] ss:$8 sps:$4 sm:$0xff]  }
 0x693   :  { %v732_v55 = vrot.slane %v711_v51, %v3795_v5  ;;  %v725_v6 = vrot.slane %v710_v57, %v3795_v5 }
 0x695   :  { %v774_v59 = vcombine.low %v718_v56, %v732_v55  ;;  %v3205_v60 = vcombine.high %v718_v56, %v732_v55 }
 0x696   :  { %v688_v58 = vpop.f32.mrb[16].mxu1 }
 0x697   :  { %v735_v61 = vcombine.high %v688_v58, %v688_v58  ;;  %v742_v62 = vrot.slane %v688_v58, %v3795_v5  ;;  %v3375_v63 = vpop.f32.mrb[17].mxu1  ;;  %v784_v7 = vrot.slane %v774_v59, %v3795_v5  ;;  %v791_v8 = vrot.slane %v3205_v60, %v3795_v5 }
 0x698   :  { %v691_v0 = vpop.f32.mrb[18].mxu1 }
 0x699   :  { %v749_v1 = vrot.slane %v735_v61, %v3795_v5  ;;  %v750_v2 = vcombine.high %v742_v62, %v742_v62  ;;  %v757_v3 = vrot.slane %v742_v62, %v3795_v5  ;;  %v3376_v4 = vpop.f32.mrb[19].mxu1  ;;  %v806_v16 = vcombine.low %v784_v7, %v791_v8 }
 0x69b   :  { %v771_v9 = vrot.slane %v750_v2, %v3795_v5  ;;  %v772_v10 = vcombine.high %v757_v3, %v757_v3  ;;  %v776_v11 = vcombine.low %v725_v6, %v757_v3  ;;  %v764_v13 = vrot.slane %v749_v1, %v3795_v5 }
 0x69c   :  { %v814_v30 = vrot.slane %v806_v16, %v3795_v5 }
 0x69d   :  { %v773_v14 = vcombine.high %v771_v9, %v771_v9  ;;  %v777_v15 = vcombine.low %v771_v9, %v772_v10  ;;  %v798_v17 = vrot.slane %v776_v11, %v3795_v5  ;;  %v3927_v9 = vld [vmem:[%s4292_s3 + $0x2] ss:$0 sm:$0xff] }
 0x69f   :  { %v805_v19 = vrot.slane %v777_v15, %v3795_v5  ;;  %v823_v20 = vcombine.low %v773_v14, %v764_v13  ;;  %v887_v22 = vpop.f32.mrb[20].mxu1 }
 0x6a0   :  { %v943_v23 = vmul.f32 0.25, %v887_v22  ;;  %v3381_v24 = vpop.f32.mrb[21].mxu1 }
 0x6a1   :  { %v807_v25 = vcombine.low %v798_v17, %v805_v19  ;;  %v830_v26 = vrot.slane %v823_v20, %v3795_v5  ;;  %v890_v27 = vpop.f32.mrb[22].mxu1 }
 0x6a2   :  { %v3382_v28 = vpop.f32.mrb[23].mxu1  ;;  %v945_v29 = vsel %vm568_vm5, %v943_v23, -inf }
 0x6a3   :  { %v821_v31 = vrot.slane %v807_v25, %v3795_v5  ;;  %946 = vmax.xlane.f32.xlu1 %v945_v29  ;;  %v837_v33 = vrot.slane %v830_v26, %v3795_v5 }
 0x6a5   :  { %v822_v32 = vcombine.low %v814_v30, %v821_v31 }
 0x6a7   :  { %v937_v34 = vpop.f32.mrb[24].mxu1  ;;  %v840_v35 = vpack.c.bf16 %v837_v33, %v822_v32 }
 0x6a8   :  { %v944_v37 = vmul.f32 0.25, %v937_v34  ;;  %v3387_v38 = vpop.f32.mrb[25].mxu1 }
 0x6a9   :  { %v940_v41 = vpop.f32.mrb[26].mxu1 }
 0x6aa   :  { %v3388_v44 = vpop.f32.mrb[27].mxu1  ;;  %v948_v45 = vsel %vm568_vm5, %v944_v37, -inf }
 0x6ab   :  { %949 = vmax.xlane.f32.xlu0 %v948_v45 }
 0x6b4   :  { %969 = vrot.lane.b32.xlu1 %v3815_v50, %s3652_s19 }
 0x6b8   :  { %1219 = vrot.lane.b32.xlu1 %v3567_v46, %s3653_s22 }
 0x6bc   :  { %1271 = vrot.lane.b32.xlu1 %v3568_v47, %s3653_s22 }
 0x6c0   :  { %1326 = vrot.lane.b32.xlu1 %v3927_v9, %s3644_s2 }
 0x730   :  { %v947_v48 = vpop.xlane.xlu1 %946 }
 0x731   :  { %v951_v49 = vsub.f32 %v943_v23, %v947_v48 }
 0x733   :  { %v953_v51 = vmul.f32 1.442695, %v951_v49 }
 0x734   :  { %v970_v52 = vpop.permute.xlu1 %969 }
 0x735   :  { %3597 = vpow2.f32 %v953_v51  ;;  %v975_v50 = vand.u32 %v970_v52, %v3847_v12 }
 0x737   :  { %3390 = vmatpush3.bf16.msra.mxu1 %v975_v50 }
 0x738   :  { %v950_v53 = vpop.xlane.xlu0 %949  ;;  %3401 = vmatprep.subr.bf16.mxu1 %v3645_v36  ;;  %v1220_v4 = vpop.permute.xlu1 %1219 }
 0x739   :  { %v952_v55 = vsub.f32 %v944_v37, %v950_v53 }
 0x73b   :  { %v955_v56 = vmul.f32 1.442695, %v952_v55 }
 0x73c   :  { %v1272_v8 = vpop.permute.xlu1 %1271 }
 0x73d   :  { %3599 = vpow2.f32 %v955_v56 }
 0x73f   :  { %v3598_v57 = vpop.eup %3597 }
 0x740   :  { %v957_v58 = vsel %vm568_vm5, %v3598_v57, 0.0 }
 0x741   :  { %958 = vadd.xlane.f32.xlu0 %v957_v58 }
 0x747   :  { %v3600_v59 = vpop.eup %3599 }
 0x748   :  { %v960_v60 = vsel %vm568_vm5, %v3600_v59, 0.0 }
 0x749   :  { %961 = vadd.xlane.f32.xlu0 %v960_v60 }
 0x75f   :  { %1017 = vrot.lane.b32.xlu0 %v3821_v54, %s3652_s19 }
 0x7ce   :  { %v959_v61 = vpop.xlane.xlu0 %958 }
 0x7cf   :  { %3601 = vrcp.f32 %v959_v61 }
 0x7d6   :  { %v962_v62 = vpop.xlane.xlu0 %961 }
 0x7d7   :  { %3603 = vrcp.f32 %v962_v62 }
 0x7d9   :  { %v3602_v63 = vpop.eup %3601 }
 0x7da   :  { %v965_v0 = vmul.f32 %v3602_v63, %v3598_v57  ;;  %v1018_v1 = vpop.permute.xlu0 %1017 }
 0x7db   :  { %v1023_v2 = vand.u32 %v1018_v1, %v3847_v12 }
 0x7dc   :  { %v967_v3 = vpack.c.bf16 %v965_v0, %v965_v0 }
 0x7dd   :  { %3396 = vmatpush3.bf16.msra.mxu0 %v1023_v2 }
 0x7de   :  { %3392 = vmatmul.mubr.msk.bf16.vlgmr.msra.gmra.mrb[28].mxu1 %vm595_vm8, %v967_v3  ;;  %3407 = vmatprep.subr.bf16.mxu0 %v3645_v36 }
 0x7df   :  { %3402 = vmatpush3.bf16.msra.mxu1 %v1220_v4  ;;  %3403 = vmatprep.mubr.msk.bf16.mxu1 %vm3646_vm3, %v3645_v36  ;;  %v1327_v4 = vpop.permute.xlu1 %1326 }
 0x7e0   :  { %3413 = vmatprep.subr.bf16.mxu1 %v3645_v36 }
 0x7e1   :  { %v3604_v54 = vpop.eup %3603 }
 0x7e2   :  { %v966_v6 = vmul.f32 %v3604_v54, %v3600_v59 }
 0x7e4   :  { %v968_v7 = vpack.c.bf16 %v966_v6, %v966_v6 }
 0x7e6   :  { %3398 = vmatmul.mubr.msk.bf16.vlgmr.msra.gmra.mrb[4].mxu0 %vm595_vm8, %v968_v7 }
 0x7e7   :  { %3408 = vmatpush3.bf16.msra.mxu0 %v1272_v8  ;;  %3409 = vmatprep.mubr.msk.bf16.mxu0 %vm3646_vm3, %v3645_v36 }
 0x7e8   :  { %3421 = vmatprep.subr.bf16.mxu0 %v3645_v36 }
 0x7ee   :  { %3410 = vmatmul.mubr.msk.bf16.vlgmr.msra.gmra.mrb[8].mxu0 %vm470_vm4, %v840_v35 }
 0x7ef   :  { %3429 = vmatprep.mubr.msk.bf16.mxu0 %vm3646_vm3, %v3645_v36 }
 0x8b1   :  { %v1011_v10 = vpop.f32.mrb[28].mxu1 }
 0x8b2   :  { %v1074_v11 = vrot.slane %v1011_v10, %v3795_v5  ;;  %v3393_v13 = vpop.f32.mrb[29].mxu1  ;;  %v1067_v17 = vcombine.high %v1011_v10, %v1011_v10 }
 0x8b3   :  { %v1014_v14 = vpop.f32.mrb[30].mxu1 }
 0x8b4   :  { %v1082_v15 = vcombine.high %v1074_v11, %v1074_v11  ;;  %v3394_v16 = vpop.f32.mrb[31].mxu1  ;;  %v1089_v20 = vrot.slane %v1074_v11, %v3795_v5  ;;  %v1081_v22 = vrot.slane %v1067_v17, %v3795_v5 }
 0x8b6   :  { %v1103_v19 = vrot.slane %v1082_v15, %v3795_v5  ;;  %v1096_v34 = vrot.slane %v1081_v22, %v3795_v5 }
 0x8b8   :  { %v1145_v24 = vcombine.low %v1089_v20, %v1103_v19  ;;  %v3210_v25 = vcombine.high %v1089_v20, %v1103_v19 }
 0x8b9   :  { %v1059_v23 = vpop.f32.mrb[4].mxu0 }
 0x8ba   :  { %v1106_v26 = vcombine.high %v1059_v23, %v1059_v23  ;;  %v1113_v27 = vrot.slane %v1059_v23, %v3795_v5  ;;  %v3399_v28 = vpop.f32.mrb[5].mxu0  ;;  %v1155_v35 = vrot.slane %v1145_v24, %v3795_v5  ;;  %v1162_v37 = vrot.slane %v3210_v25, %v3795_v5  ;;  %v3569_v25 = vld [vmem:[%s4293_s4 + $0x4] ss:$8 sps:$4 sm:$0xff]  }
 0x8bb   :  { %v1062_v29 = vpop.f32.mrb[6].mxu0 }
 0x8bc   :  { %v1120_v30 = vrot.slane %v1106_v26, %v3795_v5  ;;  %v1121_v31 = vcombine.high %v1113_v27, %v1113_v27  ;;  %v1128_v32 = vrot.slane %v1113_v27, %v3795_v5  ;;  %v3400_v33 = vpop.f32.mrb[7].mxu0  ;;  %v1177_v49 = vcombine.low %v1155_v35, %v1162_v37  ;;  %v3570_v26 = vld [vmem:[%s4293_s4 + $0x14] ss:$8 sps:$4 sm:$0xff]   ;;  %v3216_v27 = vld [vmem:[%s4292_s3 + $0x4] ss:$0 sm:$0xff] }
 0x8be   :  { %v1142_v38 = vrot.slane %v1121_v31, %v3795_v5  ;;  %v1143_v41 = vcombine.high %v1128_v32, %v1128_v32  ;;  %v1147_v44 = vcombine.low %v1096_v34, %v1128_v32  ;;  %v1135_v45 = vrot.slane %v1120_v30, %v3795_v5 }
 0x8bf   :  { %v1185_v59 = vrot.slane %v1177_v49, %v3795_v5  ;;  %v3571_v49 = vld [vmem:[%s4294_s5] sm:$0xff]  }
 0x8c0   :  { %v1144_v46 = vcombine.high %v1142_v38, %v1142_v38  ;;  %v1148_v47 = vcombine.low %v1142_v38, %v1143_v41  ;;  %v1169_v51 = vrot.slane %v1147_v44, %v3795_v5  ;;  %3422 = vmatpush3.bf16.msra.mxu0 %v3571_v49 }
 0x8c1   :  { %v1311_v48 = vpop.f32.mrb[8].mxu0  ;;  %3423 = vmatprep.subr.bf16.mxu0 %v3645_v36 }
 0x8c2   :  { %v1176_v52 = vrot.slane %v1148_v47, %v3795_v5  ;;  %v1194_v50 = vcombine.low %v1144_v46, %v1135_v45  ;;  %v3411_v53 = vpop.f32.mrb[9].mxu0 }
 0x8c3   :  { %v1314_v55 = vpop.f32.mrb[10].mxu0 }
 0x8c4   :  { %v1178_v56 = vcombine.low %v1169_v51, %v1176_v52  ;;  %v1201_v57 = vrot.slane %v1194_v50, %v3795_v5  ;;  %v3412_v58 = vpop.f32.mrb[11].mxu0  ;;  %v3572_v51 = vld [vmem:[%s4294_s5 + $0x8] sm:$0xff]   ;;  %v3573_v52 = vld [vmem:[%s4294_s5 + $0x10] sm:$0xff]   ;;  %v3574_v50 = vld [vmem:[%s4294_s5 + $0x18] sm:$0xff]  }
 0x8c5   :  { %3424 = vmatpush3.bf16.msra.mxu0 %v3572_v51 }
 0x8c6   :  { %v1192_v60 = vrot.slane %v1178_v56, %v3795_v5  ;;  %v1208_v62 = vrot.slane %v1201_v57, %v3795_v5  ;;  %3425 = vmatprep.subr.bf16.mxu0 %v3645_v36 }
 0x8c8   :  { %v1193_v61 = vcombine.low %v1185_v59, %v1192_v60 }
 0x8c9   :  { %3426 = vmatpush3.bf16.msra.mxu0 %v3573_v52 }
 0x8ca   :  { %v1211_v63 = vpack.c.bf16 %v1208_v62, %v1193_v61  ;;  %3427 = vmatprep.subr.bf16.mxu0 %v3645_v36 }
 0x8cc   :  { %3404 = vmatmul.mubr.msk.bf16.vlgmr.msra.gmra.mrb[32].mxu1 %vm470_vm4, %v1211_v63 }
 0x8cd   :  { %3417 = vmatprep.mubr.msk.bf16.mxu1 %vm3646_vm3, %v3645_v36  ;;  %3414 = vmatpush3.bf16.msra.mxu1 %v3569_v25 }
 0x8ce   :  { %3415 = vmatprep.subr.bf16.mxu1 %v3645_v36  ;;  %3428 = vmatpush3.bf16.msra.mxu0 %v3574_v50 }
 0x8cf   :  { %3447 = vmatprep.subr.bf16.mxu0 %v3645_v36 }
 0x8d1   :  { %3416 = vmatpush3.bf16.msra.mxu1 %v3570_v26 }
 0x8d2   :  { %3433 = vmatprep.subr.bf16.mxu1 %v3645_v36 }
 0x99f   :  { %v1259_v0 = vpop.f32.mrb[32].mxu1 }
 0x9a0   :  { %v1312_v1 = vadd.f32 %v1311_v48, %v1259_v0  ;;  %v3405_v2 = vpop.f32.mrb[33].mxu1 }
 0x9a1   :  { %v1262_v3 = vpop.f32.mrb[34].mxu1 }
 0x9a2   :  { %v1318_v54 = vadd.f32 %v1312_v1, %v3744_v18  ;;  %v1315_v6 = vadd.f32 %v1314_v55, %v1262_v3  ;;  %v3406_v7 = vpop.f32.mrb[35].mxu1 }
 0x9a4   :  { %v1319_v8 = vadd.f32 %v1315_v6, %v3746_v21  ;;  %v3954_v10 = vadd.f32 %v1327_v4, %v1318_v54 }
 0x9a6   :  { %v3956_v11 = vadd.f32 %v1327_v4, %v1319_v8  ;;  %v1331_v13 = vsel %vm182_vm1, %v3954_v10, 0.0 }
 0x9a7   :  { %1332 = vadd.xlane.f32.xlu0 %v1331_v13 }
 0x9a8   :  { %v1334_v14 = vsel %vm186_vm2, %v3956_v11, 0.0 }
 0x9a9   :  { %1335 = vadd.xlane.f32.xlu1 %v1334_v14 }
 0x9ba   :  { %1362 = vrot.lane.b32.xlu1 %v3927_v9, %s3653_s22 }
 0x9be   :  { %1531 = vrot.lane.b32.xlu1 %v3216_v27, %s3647_s16 }
 0xa34   :  { %v1333_v18 = vpop.xlane.xlu0 %1332 }
 0xa35   :  { %v1337_v15 = vmul.f32 0.03125, %v1333_v18 }
 0xa36   :  { %v1336_v16 = vpop.xlane.xlu1 %1335 }
 0xa37   :  { %v1339_v21 = vsub.f32 %v3954_v10, %v1337_v15  ;;  %v1338_v17 = vmul.f32 0.03125, %v1336_v16 }
 0xa39   :  { %v1340_v19 = vsub.f32 %v3956_v11, %v1338_v17  ;;  %v1341_v20 = vmul.f32 %v1339_v21, %v1339_v21 }
 0xa3a   :  { %v1363_v44 = vpop.permute.xlu1 %1362 }
 0xa3b   :  { %v1343_v22 = vsel %vm182_vm1, %v1341_v20, 0.0  ;;  %v1342_v23 = vmul.f32 %v1340_v19, %v1340_v19 }
 0xa3c   :  { %1344 = vadd.xlane.f32.xlu0 %v1343_v22 }
 0xa3d   :  { %v1346_v24 = vsel %vm186_vm2, %v1342_v23, 0.0 }
 0xa40   :  { %1347 = vadd.xlane.f32.xlu0 %v1346_v24 }
 0xa56   :  { %1357 = vrot.lane.b32.xlu0 %v3927_v9, %s3647_s16 }
 0xac9   :  { %v1345_v9 = vpop.xlane.xlu0 %1344 }
 0xaca   :  { %v1349_v28 = vmul.f32 0.03125, %v1345_v9 }
 0xacc   :  { %v1351_v29 = vadd.f32 1e-12, %v1349_v28 }
 0xacd   :  { %v1348_v30 = vpop.xlane.xlu0 %1347 }
 0xace   :  { %3605 = vrsqrt.f32 %v1351_v29  ;;  %v1350_v31 = vmul.f32 0.03125, %v1348_v30 }
 0xad0   :  { %v1352_v32 = vadd.f32 1e-12, %v1350_v31 }
 0xad1   :  { %v1358_v35 = vpop.permute.xlu0 %1357 }
 0xad2   :  { %3607 = vrsqrt.f32 %v1352_v32 }
 0xad8   :  { %v3606_v33 = vpop.eup %3605 }
 0xad9   :  { %v1355_v34 = vmul.f32 %v3606_v33, %v1339_v21 }
 0xadb   :  { %v1360_v41 = vmul.f32 %v1358_v35, %v1355_v34 }
 0xadc   :  { %v3608_v37 = vpop.eup %3607 }
 0xadd   :  { %v1356_v38 = vmul.f32 %v3608_v37, %v1340_v19  ;;  %v1365_v46 = vadd.f32 %v1363_v44, %v1360_v41  ;;  %v1532_v19 = vpop.permute.xlu1 %1531  ;;  %v3575_v41 = vld [vmem:[%s4293_s4 + $0x20] ss:$8 sps:$4 sm:$0xff]  }
 0xadf   :  { %v1361_v45 = vmul.f32 %v1358_v35, %v1356_v38 }
 0xae1   :  { %v1366_v47 = vadd.f32 %v1363_v44, %v1361_v45  ;;  %v3576_v44 = vld [vmem:[%s4293_s4 + $0x30] ss:$8 sps:$4 sm:$0xff]   ;;  %v1581_v45 = vld [vmem:[%s4292_s3 + $0x1] sm:$0x5] }
 0xae3   :  { %v1367_v48 = vpack.c.bf16 %v1366_v47, %v1365_v46  ;;  %v1590_v46 = vrot.slane %v1581_v45, %v236_v43  ;;  %v1586_v47 = vrot.slane %v1581_v45, %v3781_v42 }
 0xae5   :  { %3418 = vmatmul.mubr.msk.bf16.vlgmr.msra.gmra.mrb[36].mxu1 %vm182_vm1, %v1367_v48  ;;  %v1600_v48 = vrot.slane %v1590_v46, %v3781_v42  ;;  %v1596_v49 = vrot.slane %v1586_v47, %v3781_v42 }
 0xae6   :  { %3437 = vmatprep.mubr.msk.bf16.mxu1 %vm3646_vm3, %v3645_v36  ;;  %3434 = vmatpush3.bf16.msra.mxu1 %v3575_v41 }
 0xae7   :  { %3435 = vmatprep.subr.bf16.mxu1 %v3645_v36 }
 0xaea   :  { %3436 = vmatpush3.bf16.msra.mxu1 %v3576_v44 }
 0xaeb   :  { %3441 = vmatprep.subr.bf16.mxu1 %v3645_v36 }
 0xbb8   :  { %v1426_v53 = vpop.f32.mrb[36].mxu1 }
 0xbb9   :  { %v1427_v55 = vadd.f32 %v3216_v27, %v1426_v53  ;;  %v3419_v56 = vpop.f32.mrb[37].mxu1 }
 0xbba   :  { %v1429_v57 = vpop.f32.mrb[38].mxu1 }
 0xbbb   :  { %v1433_v58 = vmul.f32 %v1427_v55, %v1427_v55  ;;  %v1430_v59 = vadd.f32 %v3216_v27, %v1429_v57  ;;  %v3420_v60 = vpop.f32.mrb[39].mxu1 }
 0xbbd   :  { %v1435_v61 = vmul.f32 %v1433_v58, %v1427_v55  ;;  %v1434_v62 = vmul.f32 %v1430_v59, %v1430_v59 }
 0xbbf   :  { %v1437_v63 = vmul.f32 0.044715, %v1435_v61  ;;  %v1436_v0 = vmul.f32 %v1434_v62, %v1430_v59 }
 0xbc1   :  { %v1439_v1 = vadd.f32 %v1437_v63, %v1427_v55  ;;  %v1438_v2 = vmul.f32 0.044715, %v1436_v0 }
 0xbc3   :  { %v1441_v3 = vmul.f32 0.7978846, %v1439_v1  ;;  %v1440_v4 = vadd.f32 %v1438_v2, %v1430_v59 }
 0xbc5   :  { %3609 = vtanh.f32 %v1441_v3  ;;  %v1442_v54 = vmul.f32 0.7978846, %v1440_v4 }
 0xbc7   :  { %3611 = vtanh.f32 %v1442_v54 }
 0xbcf   :  { %v3610_v6 = vpop.eup %3609 }
 0xbd0   :  { %v1445_v7 = vadd.f32 1.0, %v3610_v6 }
 0xbd1   :  { %v3612_v8 = vpop.eup %3611 }
 0xbd2   :  { %v1447_v13 = vmul.f32 0.5, %v1445_v7  ;;  %v1446_v14 = vadd.f32 1.0, %v3612_v8 }
 0xbd4   :  { %v1448_v18 = vmul.f32 0.5, %v1446_v14  ;;  %v1449_v15 = vmul.f32 %v1447_v13, %v1427_v55 }
 0xbd6   :  { %v1450_v16 = vmul.f32 %v1448_v18, %v1430_v59 }
 0xbd8   :  { %v1451_v21 = vpack.c.bf16 %v1450_v16, %v1449_v15 }
 0xbda   :  { %3430 = vmatmul.mubr.msk.bf16.vlgmr.msra.gmra.mrb[12].mxu0 %vm136_vm0, %v1451_v21 }
 0xbdb   :  { %3449 = vmatprep.mubr.msk.bf16.mxu0 %vm3646_vm3, %v3645_v36 }
 0xcad   :  { %v1521_v17 = vpop.f32.mrb[12].mxu0 }
 0xcae   :  { %v1528_v20 = vadd.f32 %v1521_v17, %v3954_v10  ;;  %v3431_v22 = vpop.f32.mrb[13].mxu0  ;;  %v3225_v10 = vld [vmem:[%s4292_s3 + $0x1] ss:$0 sm:$0xff] }
 0xcaf   :  { %v1524_v23 = vpop.f32.mrb[14].mxu0 }
 0xcb0   :  { %v4005_v24 = vadd.f32 %v1532_v19, %v1528_v20  ;;  %v1529_v25 = vadd.f32 %v1524_v23, %v3956_v11  ;;  %v3432_v26 = vpop.f32.mrb[15].mxu0 }
 0xcb2   :  { %v4008_v27 = vadd.f32 %v1532_v19, %v1529_v25  ;;  %v1537_v9 = vsel %vm182_vm1, %v4005_v24, 0.0 }
 0xcb3   :  { %1538 = vadd.xlane.f32.xlu1 %v1537_v9 }
 0xcb4   :  { %v1540_v28 = vsel %vm186_vm2, %v4008_v27, 0.0 }
 0xcb5   :  { %1541 = vadd.xlane.f32.xlu0 %v1540_v28 }
 0xcc4   :  { %1570 = vrot.lane.b32.xlu1 %v3225_v10, %s3644_s2 }
 0xcc8   :  { %1617 = vrot.lane.b32.xlu1 %v1600_v48, %s3647_s16 }
 0xd40   :  { %v1539_v29 = vpop.xlane.xlu1 %1538 }
 0xd41   :  { %v1543_v30 = vmul.f32 0.03125, %v1539_v29 }
 0xd42   :  { %v1542_v11 = vpop.xlane.xlu0 %1541 }
 0xd43   :  { %v1545_v31 = vsub.f32 %v4005_v24, %v1543_v30  ;;  %v1544_v32 = vmul.f32 0.03125, %v1542_v11 }
 0xd44   :  { %v1571_v61 = vpop.permute.xlu1 %1570 }
 0xd45   :  { %v1546_v33 = vsub.f32 %v4008_v27, %v1544_v32  ;;  %v1547_v34 = vmul.f32 %v1545_v31, %v1545_v31 }
 0xd47   :  { %v1549_v35 = vsel %vm182_vm1, %v1547_v34, 0.0  ;;  %v1548_v37 = vmul.f32 %v1546_v33, %v1546_v33 }
 0xd48   :  { %1550 = vadd.xlane.f32.xlu0 %v1549_v35  ;;  %v1618_v2 = vpop.permute.xlu1 %1617 }
 0xd49   :  { %v1552_v38 = vsel %vm186_vm2, %v1548_v37, 0.0 }
 0xd4c   :  { %1553 = vadd.xlane.f32.xlu0 %v1552_v38 }
 0xd62   :  { %1615 = vrot.lane.b32.xlu0 %v1596_v49, %s3647_s16 }
 0xdd5   :  { %v1551_v51 = vpop.xlane.xlu0 %1550 }
 0xdd6   :  { %v1555_v52 = vmul.f32 0.03125, %v1551_v51 }
 0xdd8   :  { %v1557_v50 = vadd.f32 1e-12, %v1555_v52 }
 0xdd9   :  { %v1554_v53 = vpop.xlane.xlu0 %1553 }
 0xdda   :  { %3613 = vrsqrt.f32 %v1557_v50  ;;  %v1556_v55 = vmul.f32 0.03125, %v1554_v53 }
 0xddc   :  { %v1558_v56 = vadd.f32 1e-12, %v1556_v55 }
 0xddd   :  { %v1616_v3 = vpop.permute.xlu0 %1615 }
 0xdde   :  { %3615 = vrsqrt.f32 %v1558_v56  ;;  %v1619_v4 = vsel %vm136_vm0, %v1616_v3, %v1618_v2 }
 0xde4   :  { %v3614_v57 = vpop.eup %3613 }
 0xde5   :  { %v1561_v43 = vmul.f32 %v3614_v57, %v1545_v31 }
 0xde7   :  { %v1567_v60 = vmul.f32 %v3225_v10, %v1561_v43 }
 0xde8   :  { %v3616_v58 = vpop.eup %3615 }
 0xde9   :  { %v1562_v59 = vmul.f32 %v3616_v58, %v1546_v33  ;;  %v1573_v63 = vadd.f32 %v1571_v61, %v1567_v60 }
 0xdeb   :  { %v1568_v62 = vmul.f32 %v3225_v10, %v1562_v59 }
 0xded   :  { %v1574_v0 = vadd.f32 %v1571_v61, %v1568_v62 }
 0xdef   :  { %v1575_v1 = vpack.c.bf16 %v1574_v0, %v1573_v63 }
 0xdf1   :  { %3438 = vmatmul.mubr.msk.bf16.vlgmr.msra.gmra.mrb[40].mxu1 %vm182_vm1, %v1575_v1 }
 0xdf2   :  { %3443 = vmatprep.mubr.msk.bf16.mxu1 %vm3646_vm3, %v3645_v36 }
 0xec4   :  { %v1658_v54 = vpop.f32.mrb[40].mxu1 }
 0xec5   :  { %v1659_v6 = vadd.f32 %v1658_v54, %v1619_v4  ;;  %v3439_v7 = vpop.f32.mrb[41].mxu1 }
 0xec6   :  { %v1661_v8 = vpop.f32.mrb[42].mxu1 }
 0xec7   :  { %v1667_v13 = vcombine.high %v1659_v6, %v1659_v6  ;;  %v1674_v14 = vrot.slane %v1659_v6, %v3795_v5  ;;  %v1662_v18 = vadd.f32 %v1661_v8, %v1619_v4  ;;  %v3440_v15 = vpop.f32.mrb[43].mxu1 }
 0xec9   :  { %v1681_v16 = vrot.slane %v1667_v13, %v3795_v5  ;;  %v1682_v21 = vcombine.high %v1674_v14, %v1674_v14  ;;  %v1722_v17 = vrot.slane %v1662_v18, %v3795_v5  ;;  %v1690_v19 = vrot.slane %v1674_v14, %v3795_v5 }
 0xecb   :  { %v1683_v20 = vcombine.high %v1681_v16, %v1681_v16  ;;  %v1697_v22 = vrot.slane %v1681_v16, %v3795_v5  ;;  %v1704_v23 = vrot.slane %v1682_v21, %v3795_v5  ;;  %v1723_v25 = vcombine.high %v1722_v17, %v1722_v17 }
 0xecc   :  { %v1730_v30 = vrot.slane %v1722_v17, %v3795_v5 }
 0xecd   :  { %v1711_v26 = vrot.slane %v1683_v20, %v3795_v5  ;;  %v1713_v9 = vcombine.high %v1697_v22, %v1697_v22  ;;  %v1738_v28 = vcombine.low %v1690_v19, %v1704_v23  ;;  %v3233_v10 = vcombine.high %v1690_v19, %v1704_v23 }
 0xece   :  { %v1760_v29 = vrot.slane %v1697_v22, %v3795_v5  ;;  %v1737_v11 = vrot.slane %v1723_v25, %v3795_v5 }
 0xecf   :  { %v1746_v31 = vrot.slane %v1738_v28, %v3795_v5  ;;  %v1753_v32 = vrot.slane %v3233_v10, %v3795_v5  ;;  %v1777_v33 = vcombine.low %v1711_v26, %v1713_v9  ;;  %v1715_v34 = vcombine.high %v1711_v26, %v1711_v26 }
 0xed0   :  { %v1775_v38 = vrot.slane %v1760_v29, %v3795_v5  ;;  %v1799_v46 = vrot.slane %v1737_v11, %v3795_v5 }
 0xed1   :  { %v1761_v35 = vcombine.low %v1746_v31, %v1753_v32  ;;  %v1778_v37 = vcombine.low %v1715_v34, %v1730_v30  ;;  %v1785_v44 = vrot.slane %v1777_v33, %v3795_v5 }
 0xed2   :  { %v1814_v52 = vrot.slane %v1799_v46, %v3795_v5 }
 0xed3   :  { %v1768_v41 = vrot.slane %v1761_v35, %v3795_v5  ;;  %v1792_v45 = vrot.slane %v1778_v37, %v3795_v5 }
 0xed5   :  { %v1776_v47 = vcombine.low %v1768_v41, %v1775_v38  ;;  %v1800_v48 = vcombine.low %v1785_v44, %v1792_v45 }
 0xed7   :  { %v4061_v49 = vpack.c.bf16 %v1776_v47, %v1776_v47  ;;  %v1807_v51 = vrot.slane %v1800_v48, %v3795_v5 }
 0xed9   :  { %v1815_v50 = vcombine.low %v1807_v51, %v1814_v52  ;;  %1821 = vrot.lane.b32.xlu1 %v4061_v49, %s3644_s2 }
 0xedb   :  { %v4067_v53 = vpack.c.bf16 %v1815_v50, %v1815_v50 }
 0xedd   :  { %1870 = vrot.lane.b32.xlu1 %v4067_v53, %s3644_s2 }
 0xf4b   :  { %v1822_v55 = vpop.permute.xlu1 %1821 }
 0xf4c   :  { %v1827_v56 = vsel %vm470_vm4, %v1822_v55, 0 }
 0xf4d   :  { %3442 = vmatpush3.bf16.xpose.msra.mxu1 %v1827_v56 }
 0xf4e   :  { %3453 = vmatprep.subr.bf16.mxu1 %v3645_v36 }
 0xf4f   :  { %v1871_v57 = vpop.permute.xlu1 %1870 }
 0xf50   :  { %v1876_v43 = vsel %vm470_vm4, %v1871_v57, 0 }
 0xf51   :  { %3448 = vmatpush3.bf16.xpose.msra.mxu0 %v1876_v43 }
 0xf52   :  { %3459 = vmatprep.subr.bf16.mxu0 %v3645_v36 }
 0xf54   :  { %3444 = vmatmul.mubr.msk.bf16.vlgmr.msra.gmra.mrb[44].mxu1 %vm470_vm4, %v4061_v49 }
 0xf55   :  { %3455 = vmatprep.mubr.msk.bf16.mxu1 %vm3646_vm3, %v3645_v36 }
 0xf58   :  { %3450 = vmatmul.mubr.msk.bf16.vlgmr.msra.gmra.mrb[16].mxu0 %vm470_vm4, %v4067_v53 }
 0xf59   :  { %3461 = vmatprep.mubr.msk.bf16.mxu0 %vm3646_vm3, %v3645_v36 }
0x1027   :  { %v1863_v58 = vpop.f32.mrb[44].mxu1 }
0x1028   :  { %v1918_v59 = vmul.f32 0.25, %v1863_v58  ;;  %v3445_v60 = vpop.f32.mrb[45].mxu1 }
0x1029   :  { %v1866_v61 = vpop.f32.mrb[46].mxu1 }
0x102a   :  { %v3446_v62 = vpop.f32.mrb[47].mxu1  ;;  %v1920_v63 = vsel %vm568_vm5, %v1918_v59, -inf }
0x102b   :  { %v1912_v0 = vpop.f32.mrb[16].mxu0  ;;  %1921 = vmax.xlane.f32.xlu0 %v1920_v63 }
0x102c   :  { %v1919_v1 = vmul.f32 0.25, %v1912_v0  ;;  %v3451_v2 = vpop.f32.mrb[17].mxu0 }
0x102d   :  { %v1915_v3 = vpop.f32.mrb[18].mxu0 }
0x102e   :  { %v3452_v4 = vpop.f32.mrb[19].mxu0  ;;  %v1923_v54 = vsel %vm568_vm5, %v1919_v1, -inf }
0x102f   :  { %1924 = vmax.xlane.f32.xlu1 %v1923_v54 }
0x1040   :  { %1992 = vrot.lane.b32.xlu1 %v4067_v53, %s3647_s16 }
0x1044   :  { %2191 = vrot.lane.b32.xlu1 %v4061_v49, %s3649_s17 }
0x1048   :  { %2241 = vrot.lane.b32.xlu1 %v4067_v53, %s3649_s17 }
0x104c   :  { %2239 = vrot.lane.b32.xlu1 %v4067_v53, %s3650_s18 }
0x10b8   :  { %v1922_v6 = vpop.xlane.xlu0 %1921 }
0x10b9   :  { %v1926_v7 = vsub.f32 %v1918_v59, %v1922_v6 }
0x10bb   :  { %v1928_v8 = vmul.f32 1.442695, %v1926_v7 }
0x10bc   :  { %v1925_v13 = vpop.xlane.xlu1 %1924 }
0x10bd   :  { %3617 = vpow2.f32 %v1928_v8  ;;  %v1927_v14 = vsub.f32 %v1919_v1, %v1925_v13 }
0x10bf   :  { %v1930_v18 = vmul.f32 1.442695, %v1927_v14 }
0x10c0   :  { %v1993_v15 = vpop.permute.xlu1 %1992 }
0x10c1   :  { %3619 = vpow2.f32 %v1930_v18  ;;  %v1998_v16 = vand.u32 %v1993_v15, %v3847_v12 }
0x10c3   :  { %3460 = vmatpush3.bf16.msra.mxu0 %v1998_v16 }
0x10c4   :  { %3471 = vmatprep.subr.bf16.mxu0 %v3645_v36  ;;  %v2192_v28 = vpop.permute.xlu1 %2191 }
0x10c5   :  { %v2197_v33 = vsel %vm470_vm4, %v2192_v28, 0 }
0x10c7   :  { %v3618_v21 = vpop.eup %3617 }
0x10c8   :  { %v1932_v17 = vsel %vm568_vm5, %v3618_v21, 0.0  ;;  %v2242_v31 = vpop.permute.xlu1 %2241 }
0x10c9   :  { %1933 = vadd.xlane.f32.xlu0 %v1932_v17  ;;  %v2247_v34 = vsel %vm470_vm4, %v2242_v31, 0 }
0x10cb   :  { %v3620_v19 = vpop.eup %3619 }
0x10cc   :  { %v1935_v20 = vsel %vm568_vm5, %v3620_v19, 0.0  ;;  %v2240_v37 = vpop.permute.xlu1 %2239 }
0x10cd   :  { %1936 = vadd.xlane.f32.xlu0 %v1935_v20 }
0x10e3   :  { %1944 = vrot.lane.b32.xlu0 %v4061_v49, %s3647_s16 }
0x10e7   :  { %2189 = vrot.lane.b32.xlu0 %v4061_v49, %s3650_s18 }
0x1156   :  { %v1934_v22 = vpop.xlane.xlu0 %1933 }
0x1157   :  { %3621 = vrcp.f32 %v1934_v22 }
0x115a   :  { %v1937_v23 = vpop.xlane.xlu0 %1936 }
0x115b   :  { %3623 = vrcp.f32 %v1937_v23 }
0x115e   :  { %v1945_v25 = vpop.permute.xlu0 %1944 }
0x115f   :  { %v1950_v26 = vand.u32 %v1945_v25, %v3847_v12 }
0x1161   :  { %v3622_v9 = vpop.eup %3621  ;;  %3454 = vmatpush3.bf16.msra.mxu1 %v1950_v26 }
0x1162   :  { %v1940_v10 = vmul.f32 %v3622_v9, %v3618_v21  ;;  %3465 = vmatprep.subr.bf16.mxu1 %v3645_v36  ;;  %v2190_v35 = vpop.permute.xlu0 %2189 }
0x1164   :  { %v1942_v29 = vpack.c.bf16 %v1940_v10, %v1940_v10 }
0x1165   :  { %v3624_v30 = vpop.eup %3623 }
0x1166   :  { %v1941_v11 = vmul.f32 %v3624_v30, %v3620_v19  ;;  %3456 = vmatmul.mubr.msk.bf16.vlgmr.msra.gmra.mrb[48].mxu1 %vm595_vm8, %v1942_v29 }
0x1167   :  { %3467 = vmatprep.mubr.msk.bf16.mxu1 %vm3646_vm3, %v3645_v36 }
0x1168   :  { %v1943_v32 = vpack.c.bf16 %v1941_v11, %v1941_v11 }
0x116a   :  { %3462 = vmatmul.mubr.msk.bf16.vlgmr.msra.gmra.mrb[20].mxu0 %vm595_vm8, %v1943_v32  ;;  %3466 = vmatpush3.bf16.xpose.msra.mxu1 %v2197_v33 }
0x116b   :  { %3472 = vmatpush3.bf16.xpose.msra.mxu0 %v2247_v34  ;;  %3473 = vmatprep.mubr.msk.bf16.mxu0 %vm3646_vm3, %v3645_v36 }
0x116c   :  { %3483 = vmatprep.subr.bf16.mxu0 %v3645_v36  ;;  %3477 = vmatprep.subr.bf16.mxu1 %v3645_v36 }
0x1171   :  { %3468 = vmatmul.mubr.msk.bf16.vlgmr.msra.gmra.mrb[52].mxu1 %vm470_vm4, %v2190_v35 }
0x1172   :  { %3474 = vmatmul.mubr.msk.bf16.vlgmr.msra.gmra.mrb[24].mxu0 %vm470_vm4, %v2240_v37  ;;  %3479 = vmatprep.mubr.msk.bf16.mxu1 %vm3646_vm3, %v3645_v36  ;;  %v3577_v37 = vld [vmem:[%s4293_s4 + $0x30] ss:$8 sps:$4 sm:$0xff]  }
0x1173   :  { %3485 = vmatprep.mubr.msk.bf16.mxu0 %vm3646_vm3, %v3645_v36 }
0x1239   :  { %v1986_v38 = vpop.f32.mrb[48].mxu1 }
0x123a   :  { %v2042_v41 = vcombine.high %v1986_v38, %v1986_v38  ;;  %v2049_v44 = vrot.slane %v1986_v38, %v3795_v5  ;;  %v3457_v45 = vpop.f32.mrb[49].mxu1  ;;  %v3578_v38 = vld [vmem:[%s4293_s4 + $0x20] ss:$8 sps:$4 sm:$0xff]  }
0x123b   :  { %v1989_v46 = vpop.f32.mrb[50].mxu1 }
0x123c   :  { %v2057_v47 = vcombine.high %v2049_v44, %v2049_v44  ;;  %v3458_v48 = vpop.f32.mrb[51].mxu1  ;;  %v2056_v51 = vrot.slane %v2042_v41, %v3795_v5  ;;  %v2064_v50 = vrot.slane %v2049_v44, %v3795_v5 }
0x123d   :  { %v2034_v52 = vpop.f32.mrb[20].mxu0 }
0x123e   :  { %v2078_v55 = vrot.slane %v2057_v47, %v3795_v5  ;;  %v2081_v56 = vcombine.high %v2034_v52, %v2034_v52  ;;  %v2088_v57 = vrot.slane %v2034_v52, %v3795_v5  ;;  %v3463_v43 = vpop.f32.mrb[21].mxu0  ;;  %v2071_v0 = vrot.slane %v2056_v51, %v3795_v5 }
0x123f   :  { %v2037_v58 = vpop.f32.mrb[22].mxu0 }
0x1240   :  { %v2120_v59 = vcombine.low %v2064_v50, %v2078_v55  ;;  %v3238_v60 = vcombine.high %v2064_v50, %v2078_v55  ;;  %v2095_v61 = vrot.slane %v2081_v56, %v3795_v5  ;;  %v2096_v62 = vcombine.high %v2088_v57, %v2088_v57  ;;  %v3464_v63 = vpop.f32.mrb[23].mxu0 }
0x1241   :  { %v2103_v1 = vrot.slane %v2088_v57, %v3795_v5 }
0x1242   :  { %v2117_v2 = vrot.slane %v2096_v62, %v3795_v5  ;;  %v2130_v3 = vrot.slane %v2120_v59, %v3795_v5  ;;  %v2137_v4 = vrot.slane %v3238_v60, %v3795_v5  ;;  %v2110_v7 = vrot.slane %v2095_v61, %v3795_v5 }
0x1243   :  { %v2118_v54 = vcombine.high %v2103_v1, %v2103_v1  ;;  %v2122_v6 = vcombine.low %v2071_v0, %v2103_v1 }
0x1244   :  { %v2119_v8 = vcombine.high %v2117_v2, %v2117_v2  ;;  %v2233_v13 = vpop.f32.mrb[52].mxu1  ;;  %v2152_v22 = vcombine.low %v2130_v3, %v2137_v4 }
0x1245   :  { %v2123_v14 = vcombine.low %v2117_v2, %v2118_v54  ;;  %v2289_v18 = vmul.f32 0.25, %v2233_v13  ;;  %v3469_v15 = vpop.f32.mrb[53].mxu1  ;;  %v2283_v16 = vpop.f32.mrb[24].mxu0  ;;  %v2144_v23 = vrot.slane %v2122_v6, %v3795_v5 }
0x1246   :  { %v2169_v21 = vcombine.low %v2119_v8, %v2110_v7  ;;  %v2290_v17 = vmul.f32 0.25, %v2283_v16  ;;  %v2236_v19 = vpop.f32.mrb[54].mxu1  ;;  %v3475_v20 = vpop.f32.mrb[25].mxu0  ;;  %v2160_v31 = vrot.slane %v2152_v22, %v3795_v5 }
0x1247   :  { %v2151_v25 = vrot.slane %v2123_v14, %v3795_v5  ;;  %v3470_v26 = vpop.f32.mrb[55].mxu1  ;;  %v2286_v9 = vpop.f32.mrb[26].mxu0  ;;  %v2291_v28 = vsel %vm568_vm5, %v2289_v18, -inf }
0x1248   :  { %v3476_v10 = vpop.f32.mrb[27].mxu0  ;;  %2292 = vmax.xlane.f32.xlu0 %v2291_v28  ;;  %v2294_v29 = vsel %vm568_vm5, %v2290_v17, -inf  ;;  %v2176_v11 = vrot.slane %v2169_v21, %v3795_v5 }
0x1249   :  { %v2153_v30 = vcombine.low %v2144_v23, %v2151_v25  ;;  %2295 = vmax.xlane.f32.xlu1 %v2294_v29 }
0x124a   :  { %v2183_v34 = vrot.slane %v2176_v11, %v3795_v5 }
0x124b   :  { %v2167_v32 = vrot.slane %v2153_v30, %v3795_v5 }
0x124d   :  { %v2168_v33 = vcombine.low %v2160_v31, %v2167_v32 }
0x124f   :  { %v2186_v35 = vpack.c.bf16 %v2183_v34, %v2168_v33 }
0x125a   :  { %2363 = vrot.lane.b32.xlu1 %v4067_v53, %s3652_s19 }
0x125e   :  { %2565 = vrot.lane.b32.xlu1 %v3577_v37, %s3653_s22 }
0x1262   :  { %2617 = vrot.lane.b32.xlu1 %v3578_v38, %s3653_s22 }
0x12d5   :  { %v2293_v41 = vpop.xlane.xlu0 %2292 }
0x12d6   :  { %v2297_v44 = vsub.f32 %v2289_v18, %v2293_v41  ;;  %v2296_v45 = vpop.xlane.xlu1 %2295 }
0x12d7   :  { %v2298_v46 = vsub.f32 %v2290_v17, %v2296_v45 }
0x12d8   :  { %v2299_v47 = vmul.f32 1.442695, %v2297_v44 }
0x12d9   :  { %v2301_v48 = vmul.f32 1.442695, %v2298_v46 }
0x12da   :  { %3625 = vpow2.f32 %v2299_v47  ;;  %v2364_v53 = vpop.permute.xlu1 %2363 }
0x12db   :  { %v2369_v51 = vand.u32 %v2364_v53, %v3847_v12  ;;  %3627 = vpow2.f32 %v2301_v48 }
0x12dd   :  { %3484 = vmatpush3.bf16.msra.mxu0 %v2369_v51 }
0x12de   :  { %3495 = vmatprep.subr.bf16.mxu0 %v3645_v36  ;;  %v2566_v62 = vpop.permute.xlu1 %2565 }
0x12e2   :  { %v2618_v2 = vpop.permute.xlu1 %2617 }
0x12e4   :  { %v3626_v52 = vpop.eup %3625 }
0x12e5   :  { %v2303_v50 = vsel %vm568_vm5, %v3626_v52, 0.0  ;;  %v3628_v55 = vpop.eup %3627 }
0x12e6   :  { %2304 = vadd.xlane.f32.xlu0 %v2303_v50  ;;  %v2306_v56 = vsel %vm568_vm5, %v3628_v55, 0.0 }
0x12ea   :  { %2307 = vadd.xlane.f32.xlu0 %v2306_v56 }
0x1300   :  { %2315 = vrot.lane.b32.xlu0 %v4061_v49, %s3652_s19 }
0x1373   :  { %v2305_v57 = vpop.xlane.xlu0 %2304 }
0x1374   :  { %3629 = vrcp.f32 %v2305_v57 }
0x1377   :  { %v2308_v43 = vpop.xlane.xlu0 %2307 }
0x1378   :  { %3631 = vrcp.f32 %v2308_v43 }
0x137b   :  { %v2316_v58 = vpop.permute.xlu0 %2315 }
0x137c   :  { %v2321_v59 = vand.u32 %v2316_v58, %v3847_v12  ;;  %v4171_v12 = vld [vmem:[%s4292_s3 + $0x3] ss:$0 sm:$0xff] }
0x137d   :  { %2672 = vrot.lane.b32.xlu0 %v4171_v12, %s3644_s2 }
0x137e   :  { %v3630_v60 = vpop.eup %3629  ;;  %3478 = vmatpush3.bf16.msra.mxu1 %v2321_v59 }
0x137f   :  { %v2311_v61 = vmul.f32 %v3630_v60, %v3626_v52  ;;  %3489 = vmatprep.subr.bf16.mxu1 %v3645_v36 }
0x1381   :  { %v2313_v63 = vpack.c.bf16 %v2311_v61, %v2311_v61 }
0x1382   :  { %v3632_v0 = vpop.eup %3631 }
0x1383   :  { %v2312_v1 = vmul.f32 %v3632_v0, %v3628_v55  ;;  %3480 = vmatmul.mubr.msk.bf16.vlgmr.msra.gmra.mrb[56].mxu1 %vm595_vm8, %v2313_v63 }
0x1384   :  { %3490 = vmatpush3.bf16.msra.mxu1 %v2566_v62  ;;  %3491 = vmatprep.mubr.msk.bf16.mxu1 %vm3646_vm3, %v3645_v36 }
0x1385   :  { %v2314_v49 = vpack.c.bf16 %v2312_v1, %v2312_v1  ;;  %3501 = vmatprep.subr.bf16.mxu1 %v3645_v36 }
0x1387   :  { %3486 = vmatmul.mubr.msk.bf16.vlgmr.msra.gmra.mrb[28].mxu0 %vm595_vm8, %v2314_v49 }
0x1388   :  { %3496 = vmatpush3.bf16.msra.mxu0 %v2618_v2  ;;  %3497 = vmatprep.mubr.msk.bf16.mxu0 %vm3646_vm3, %v3645_v36 }
0x1389   :  { %3509 = vmatprep.subr.bf16.mxu0 %v3645_v36 }
0x138f   :  { %3498 = vmatmul.mubr.msk.bf16.vlgmr.msra.gmra.mrb[32].mxu0 %vm470_vm4, %v2186_v35 }
0x1390   :  { %3517 = vmatprep.mubr.msk.bf16.mxu0 %vm3646_vm3, %v3645_v36 }
0x13ef   :  { %v2673_v61 = vpop.permute.xlu0 %2672 }
0x1456   :  { %v2357_v3 = vpop.f32.mrb[56].mxu1 }
0x1457   :  { %v2413_v4 = vcombine.high %v2357_v3, %v2357_v3  ;;  %v2420_v54 = vrot.slane %v2357_v3, %v3795_v5  ;;  %v3481_v6 = vpop.f32.mrb[57].mxu1 }
0x1458   :  { %v2360_v7 = vpop.f32.mrb[58].mxu1 }
0x1459   :  { %v2428_v8 = vcombine.high %v2420_v54, %v2420_v54  ;;  %v3482_v13 = vpop.f32.mrb[59].mxu1  ;;  %v2427_v14 = vrot.slane %v2413_v4, %v3795_v5  ;;  %v2435_v15 = vrot.slane %v2420_v54, %v3795_v5 }
0x145a   :  { %v2405_v18 = vpop.f32.mrb[28].mxu0 }
0x145b   :  { %v2449_v16 = vrot.slane %v2428_v8, %v3795_v5  ;;  %v2452_v21 = vcombine.high %v2405_v18, %v2405_v18  ;;  %v2459_v17 = vrot.slane %v2405_v18, %v3795_v5  ;;  %v3487_v19 = vpop.f32.mrb[29].mxu0  ;;  %v2442_v28 = vrot.slane %v2427_v14, %v3795_v5 }
0x145c   :  { %v2408_v20 = vpop.f32.mrb[30].mxu0 }
0x145d   :  { %v2491_v22 = vcombine.low %v2435_v15, %v2449_v16  ;;  %v3245_v23 = vcombine.high %v2435_v15, %v2449_v16  ;;  %v2466_v25 = vrot.slane %v2452_v21, %v3795_v5  ;;  %v2467_v26 = vcombine.high %v2459_v17, %v2459_v17  ;;  %v3488_v9 = vpop.f32.mrb[31].mxu0  ;;  %v3579_v16 = vld [vmem:[%s4293_s4 + $0x24] ss:$8 sps:$4 sm:$0xff]   ;;  %v3580_v21 = vld [vmem:[%s4293_s4 + $0x34] ss:$8 sps:$4 sm:$0xff]  }
0x145e   :  { %v2474_v10 = vrot.slane %v2459_v17, %v3795_v5  ;;  %v3257_v17 = vld [vmem:[%s4292_s3 + $0x5] ss:$0 sm:$0xff] }
0x145f   :  { %v2488_v29 = vrot.slane %v2467_v26, %v3795_v5  ;;  %v2501_v30 = vrot.slane %v2491_v22, %v3795_v5  ;;  %v2508_v11 = vrot.slane %v3245_v23, %v3795_v5  ;;  %v2481_v33 = vrot.slane %v2466_v25, %v3795_v5 }
0x1460   :  { %v2489_v31 = vcombine.high %v2474_v10, %v2474_v10  ;;  %v2493_v32 = vcombine.low %v2442_v28, %v2474_v10 }
0x1461   :  { %v2490_v34 = vcombine.high %v2488_v29, %v2488_v29  ;;  %v2523_v44 = vcombine.low %v2501_v30, %v2508_v11 }
0x1462   :  { %v2494_v35 = vcombine.low %v2488_v29, %v2489_v31  ;;  %v2657_v37 = vpop.f32.mrb[32].mxu0  ;;  %v2515_v45 = vrot.slane %v2493_v32, %v3795_v5 }
0x1463   :  { %v2540_v38 = vcombine.low %v2490_v34, %v2481_v33  ;;  %v3499_v41 = vpop.f32.mrb[33].mxu0  ;;  %v2531_v52 = vrot.slane %v2523_v44, %v3795_v5 }
0x1464   :  { %v2522_v46 = vrot.slane %v2494_v35, %v3795_v5  ;;  %v2660_v47 = vpop.f32.mrb[34].mxu0  ;;  %v3581_v35 = vld [vmem:[%s4294_s5 + $0x20] sm:$0xff]   ;;  %v3584_v41 = vld [vmem:[%s4294_s5 + $0x38] sm:$0xff]  }
0x1465   :  { %v3500_v48 = vpop.f32.mrb[35].mxu0  ;;  %v2547_v51 = vrot.slane %v2540_v38, %v3795_v5  ;;  %3510 = vmatpush3.bf16.msra.mxu0 %v3581_v35  ;;  %v3583_v38 = vld [vmem:[%s4294_s5 + $0x30] sm:$0xff]  }
0x1466   :  { %v2524_v53 = vcombine.low %v2515_v45, %v2522_v46  ;;  %3511 = vmatprep.subr.bf16.mxu0 %v3645_v36  ;;  %v3051_v35 = vld [vmem:[%s4295_s6 + $0x13] sm:$0xff] }
0x1467   :  { %v2554_v56 = vrot.slane %v2547_v51, %v3795_v5 }
0x1468   :  { %v2538_v50 = vrot.slane %v2524_v53, %v3795_v5 }
0x146a   :  { %v2539_v55 = vcombine.low %v2531_v52, %v2538_v50 }
0x146c   :  { %v2557_v57 = vpack.c.bf16 %v2554_v56, %v2539_v55 }
0x146e   :  { %3492 = vmatmul.mubr.msk.bf16.vlgmr.msra.gmra.mrb[60].mxu1 %vm470_vm4, %v2557_v57 }
0x146f   :  { %3505 = vmatprep.mubr.msk.bf16.mxu1 %vm3646_vm3, %v3645_v36  ;;  %3502 = vmatpush3.bf16.msra.mxu1 %v3579_v16 }
0x1470   :  { %3503 = vmatprep.subr.bf16.mxu1 %v3645_v36 }
0x1473   :  { %3504 = vmatpush3.bf16.msra.mxu1 %v3580_v21 }
0x1541   :  { %v2605_v43 = vpop.f32.mrb[60].mxu1 }
0x1542   :  { %v2658_v58 = vadd.f32 %v2657_v37, %v2605_v43  ;;  %v3493_v59 = vpop.f32.mrb[61].mxu1  ;;  %v3582_v37 = vld [vmem:[%s4294_s5 + $0x28] sm:$0xff]  }
0x1543   :  { %v2608_v60 = vpop.f32.mrb[62].mxu1  ;;  %3512 = vmatpush3.bf16.msra.mxu0 %v3582_v37  ;;  %v3654_v37 = vmov 0.0|0.0  }
0x1544   :  { %v2664_v62 = vadd.f32 %v2658_v58, %v4005_v24  ;;  %v2661_v63 = vadd.f32 %v2660_v47, %v2608_v60  ;;  %v3494_v0 = vpop.f32.mrb[63].mxu1  ;;  %3513 = vmatprep.subr.bf16.mxu0 %v3645_v36  ;;  %3532 = vmatprep.subr.bf16.mxu1 %v3654_v37 }
0x1546   :  { %v2665_v1 = vadd.f32 %v2661_v63, %v4008_v27  ;;  %v4198_v49 = vadd.f32 %v2673_v61, %v2664_v62 }
0x1547   :  { %3514 = vmatpush3.bf16.msra.mxu0 %v3583_v38 }
0x1548   :  { %v2676_v2 = vadd.f32 %v2673_v61, %v2665_v1  ;;  %v2677_v3 = vsel %vm182_vm1, %v4198_v49, 0.0  ;;  %3515 = vmatprep.subr.bf16.mxu0 %v3645_v36 }
0x1549   :  { %2678 = vadd.xlane.f32.xlu1 %v2677_v3 }
0x154a   :  { %v2680_v4 = vsel %vm186_vm2, %v2676_v2, 0.0 }
0x154b   :  { %2681 = vadd.xlane.f32.xlu0 %v2680_v4  ;;  %3516 = vmatpush3.bf16.msra.mxu0 %v3584_v41  ;;  %v3052_v41 = vld [vmem:[%s4295_s6 + $0x1b] sm:$0xff] }
0x155a   :  { %2703 = vrot.lane.b32.xlu1 %v4171_v12, %s3647_s16 }
0x155e   :  { %2876 = vrot.lane.b32.xlu1 %v3257_v17, %s3647_s16 }
0x15d6   :  { %v2679_v54 = vpop.xlane.xlu1 %2678 }
0x15d7   :  { %v2683_v6 = vmul.f32 0.03125, %v2679_v54 }
0x15d8   :  { %v2682_v24 = vpop.xlane.xlu0 %2681 }
0x15d9   :  { %v2685_v7 = vsub.f32 %v4198_v49, %v2683_v6  ;;  %v2684_v8 = vmul.f32 0.03125, %v2682_v24 }
0x15da   :  { %v2704_v28 = vpop.permute.xlu1 %2703 }
0x15db   :  { %v2686_v27 = vsub.f32 %v2676_v2, %v2684_v8  ;;  %v2687_v13 = vmul.f32 %v2685_v7, %v2685_v7 }
0x15dd   :  { %v2689_v14 = vsel %vm182_vm1, %v2687_v13, 0.0  ;;  %v2688_v18 = vmul.f32 %v2686_v27, %v2686_v27 }
0x15de   :  { %2690 = vadd.xlane.f32.xlu0 %v2689_v14  ;;  %v2877_v6 = vpop.permute.xlu1 %2876 }
0x15df   :  { %v2692_v15 = vsel %vm186_vm2, %v2688_v18, 0.0 }
0x15e2   :  { %2693 = vadd.xlane.f32.xlu0 %v2692_v15 }
0x15f8   :  { %2708 = vrot.lane.b32.xlu0 %v4171_v12, %s3653_s22 }
0x166b   :  { %v2691_v19 = vpop.xlane.xlu0 %2690 }
0x166c   :  { %v2695_v12 = vmul.f32 0.03125, %v2691_v19 }
0x166e   :  { %v2697_v20 = vadd.f32 1e-12, %v2695_v12 }
0x166f   :  { %v2694_v22 = vpop.xlane.xlu0 %2693 }
0x1670   :  { %3633 = vrsqrt.f32 %v2697_v20  ;;  %v2696_v23 = vmul.f32 0.03125, %v2694_v22  ;;  %v2942_v22 = vsub.s32 1, %v3775_v40  ;;  %v3049_v40 = vld [vmem:[%s4295_s6 + $0x3] sm:$0xff] }
0x1672   :  { %v2698_v25 = vadd.f32 1e-12, %v2696_v23 }
0x1673   :  { %v2709_v11 = vpop.permute.xlu0 %2708 }
0x1674   :  { %3635 = vrsqrt.f32 %v2698_v25 }
0x167a   :  { %v3634_v26 = vpop.eup %3633 }
0x167b   :  { %v2701_v9 = vmul.f32 %v3634_v26, %v2685_v7 }
0x167d   :  { %v2706_v30 = vmul.f32 %v2704_v28, %v2701_v9 }
0x167e   :  { %v3636_v10 = vpop.eup %3635 }
0x167f   :  { %v2702_v29 = vmul.f32 %v3636_v10, %v2686_v27  ;;  %v2711_v32 = vadd.f32 %v2709_v11, %v2706_v30 }
0x1681   :  { %v2707_v31 = vmul.f32 %v2704_v28, %v2702_v29 }
0x1683   :  { %v2712_v33 = vadd.f32 %v2709_v11, %v2707_v31 }
0x1685   :  { %v2713_v34 = vpack.c.bf16 %v2712_v33, %v2711_v32 }
0x1687   :  { %3506 = vmatmul.mubr.msk.bf16.vlgmr.msra.gmra.mrb[64].mxu1 %vm182_vm1, %v2713_v34  ;;  %v3050_v34 = vld [vmem:[%s4295_s6 + $0xb] sm:$0xff] }
0x1688   :  { %3529 = vmatprep.mubr.msk.f32.mxu1 %vm3646_vm3, %v3645_v36  ;;  %v3533_v38 = vpack.c.bf16 %v3050_v34, %v3049_v40 }
0x168a   :  { %3534 = vmatpush3.bf16.msra.mxu1 %v3533_v38 }
0x168b   :  { %3535 = vmatprep.subr.bf16.mxu1 %v3654_v37 }
0x175a   :  { %v2772_v44 = vpop.f32.mrb[64].mxu1 }
0x175b   :  { %v2773_v45 = vadd.f32 %v3257_v17, %v2772_v44  ;;  %v3507_v46 = vpop.f32.mrb[65].mxu1  ;;  %v3536_v44 = vpack.c.bf16 %v3052_v41, %v3051_v35 }
0x175c   :  { %v2775_v47 = vpop.f32.mrb[66].mxu1 }
0x175d   :  { %v2779_v48 = vmul.f32 %v2773_v45, %v2773_v45  ;;  %v2776_v53 = vadd.f32 %v3257_v17, %v2775_v47  ;;  %v3508_v51 = vpop.f32.mrb[67].mxu1  ;;  %3537 = vmatpush3.bf16.msra.mxu1 %v3536_v44 }
0x175f   :  { %v2781_v52 = vmul.f32 %v2779_v48, %v2773_v45  ;;  %v2780_v50 = vmul.f32 %v2776_v53, %v2776_v53  ;;  %v3274_v48 = vld [vmem:[%s4295_s6] ss:$0 sm:$0xff] }
0x1760   :  { %v2998_v51 = vrot.slane %v3274_v48, %v3795_v5 }
0x1761   :  { %v2783_v55 = vmul.f32 0.044715, %v2781_v52  ;;  %v2782_v56 = vmul.f32 %v2780_v50, %v2776_v53 }
0x1762   :  { %v2999_v50 = vcombine.high %v2998_v51, %v2998_v51 }
0x1763   :  { %v2785_v57 = vadd.f32 %v2783_v55, %v2773_v45  ;;  %v2784_v43 = vmul.f32 0.044715, %v2782_v56 }
0x1765   :  { %v2787_v58 = vmul.f32 0.7978846, %v2785_v57  ;;  %v2786_v36 = vadd.f32 %v2784_v43, %v2776_v53  ;;  %v3006_v57 = vrot.slane %v2998_v51, %v3795_v5  ;;  %v3013_v43 = vrot.slane %v2999_v50, %v3795_v5 }
0x1767   :  { %3637 = vtanh.f32 %v2787_v58  ;;  %v2788_v59 = vmul.f32 0.7978846, %v2786_v36 }
0x1769   :  { %3639 = vtanh.f32 %v2788_v59 }
0x1771   :  { %v3638_v60 = vpop.eup %3637 }
0x1772   :  { %v2791_v61 = vadd.f32 1.0, %v3638_v60 }
0x1773   :  { %v3640_v62 = vpop.eup %3639 }
0x1774   :  { %v2793_v63 = vmul.f32 0.5, %v2791_v61  ;;  %v2792_v0 = vadd.f32 1.0, %v3640_v62 }
0x1776   :  { %v2794_v1 = vmul.f32 0.5, %v2792_v0  ;;  %v2795_v2 = vmul.f32 %v2793_v63, %v2773_v45 }
0x1778   :  { %v2796_v3 = vmul.f32 %v2794_v1, %v2776_v53  ;;  %v3275_v53 = vld [vmem:[%s4295_s6 + $0x1] ss:$0 sm:$0xff] }
0x1779   :  { %v3029_v52 = vrot.slane %v3275_v53, %v3795_v5 }
0x177a   :  { %v2797_v4 = vpack.c.bf16 %v2796_v3, %v2795_v2 }
0x177b   :  { %v3030_v55 = vcombine.high %v3029_v52, %v3029_v52  ;;  %v3037_v61 = vrot.slane %v3029_v52, %v3795_v5 }
0x177c   :  { %3518 = vmatmul.mubr.msk.bf16.vlgmr.msra.gmra.mrb[36].mxu0 %vm136_vm0, %v2797_v4 }
0x177d   :  { %v3044_v62 = vrot.slane %v3030_v55, %v3795_v5 }
0x184f   :  { %v2868_v54 = vpop.f32.mrb[36].mxu0 }
0x1850   :  { %v2874_v24 = vadd.f32 %v2868_v54, %v4198_v49  ;;  %v3519_v7 = vpop.f32.mrb[37].mxu0 }
0x1851   :  { %v2871_v8 = vpop.f32.mrb[38].mxu0 }
0x1852   :  { %v2879_v27 = vadd.f32 %v2877_v6, %v2874_v24  ;;  %v3520_v13 = vpop.f32.mrb[39].mxu0 }
0x1854   :  { %v2881_v14 = vcombine.high %v2879_v27, %v2879_v27  ;;  %v2888_v18 = vrot.slane %v2879_v27, %v3795_v5  ;;  %v3149_v27 = vand.u32 127, %v230_v39 }
0x1856   :  { %v2895_v15 = vrot.slane %v2881_v14, %v3795_v5  ;;  %v2903_v21 = vrot.slane %v2888_v18, %v3795_v5 }
0x1858   :  { %v2896_v16 = vcombine.high %v2895_v15, %v2895_v15 }
0x185a   :  { %v2910_v17 = vrot.slane %v2896_v16, %v3795_v5 }
0x185c   :  { %v2915_v19 = vcombine.low %v2903_v21, %v2910_v17 }
0x185e   :  { %v2922_v12 = vrot.slane %v2915_v19, %v3795_v5 }
0x1860   :  { %v2929_v20 = vrot.slane %v2922_v12, %v3795_v5 }
0x1862   :  { %v2931_v49 = vsel %vm186_vm2, %v2929_v20, 0.0 }
0x1863   :  { %2932 = vadd.xlane.f32.xlu1 %v2931_v49 }
0x18f0   :  { %v2933_v23 = vpop.xlane.xlu1 %2932 }
0x18f1   :  { %v2934_v25 = vmul.f32 0.03125, %v2933_v23 }
0x18f3   :  { %v2939_v26 = vrot.slane %v2934_v25, %v3781_v42  ;;  %v2943_v9 = vrot.slane %v2934_v25, %v2942_v22 }
0x18f5   :  { %v2946_v28 = vsub.f32 %v2903_v21, %v2939_v26  ;;  %v2947_v10 = vsub.f32 %v2910_v17, %v2943_v9 }
0x18f7   :  { %v2948_v29 = vmul.f32 %v2946_v28, %v2946_v28  ;;  %v2949_v30 = vmul.f32 %v2947_v10, %v2947_v10 }
0x18f9   :  { %v2952_v11 = vcombine.low %v2948_v29, %v2949_v30 }
0x18fb   :  { %v2959_v31 = vrot.slane %v2952_v11, %v3795_v5 }
0x18fd   :  { %v2966_v32 = vrot.slane %v2959_v31, %v3795_v5 }
0x18ff   :  { %v2968_v33 = vsel %vm186_vm2, %v2966_v32, 0.0 }
0x1900   :  { %2969 = vadd.xlane.f32.xlu0 %v2968_v33 }
0x198d   :  { %v2970_v45 = vpop.xlane.xlu0 %2969 }
0x198e   :  { %v2971_v46 = vmul.f32 0.03125, %v2970_v45 }
0x1990   :  { %v2972_v47 = vadd.f32 1e-12, %v2971_v46 }
0x1992   :  { %3641 = vrsqrt.f32 %v2972_v47 }
0x199c   :  { %v3642_v56 = vpop.eup %3641 }
0x199d   :  { %v2978_v58 = vrot.slane %v3642_v56, %v3781_v42  ;;  %v2982_v36 = vrot.slane %v3642_v56, %v2942_v22  ;;  %v3277_v42 = vld [vmem:[%s4295_s6 + $0x2] ss:$0 sm:$0xff] }
0x199f   :  { %v2985_v59 = vmul.f32 %v2978_v58, %v2946_v28  ;;  %v2986_v60 = vmul.f32 %v2982_v36, %v2947_v10 }
0x19a1   :  { %v3016_v63 = vmul.f32 %v3006_v57, %v2985_v59  ;;  %v3017_v0 = vmul.f32 %v3013_v43, %v2986_v60 }
0x19a3   :  { %v3047_v1 = vadd.f32 %v3037_v61, %v3016_v63  ;;  %v3048_v2 = vadd.f32 %v3044_v62, %v3017_v0 }
0x19a5   :  { %v3055_v3 = vcombine.low %v3047_v1, %v3048_v2 }
0x19a7   :  { %v3062_v4 = vrot.slane %v3055_v3, %v3795_v5 }
0x19a9   :  { %v3069_v54 = vrot.slane %v3062_v4, %v3795_v5 }
0x19ab   :  { %3530 = vmatmul.mubr.msk.f32.vlgmr.msra.gmra.mrb[68].mxu1 %vm182_vm1, %v3069_v54 }
0x1a7e   :  { %v3138_v6 = vpop.f32.mrb[68].mxu1 }
0x1a7f   :  { %v3147_v24 = vadd.f32 %v3277_v42, %v3138_v6  ;;  %v3531_v7 = vpop.f32.mrb[69].mxu1 }
0x1a81   :  { %v3151_v8 = vsel %vm3150_vm9, %v3147_v24, -inf }
0x1a82   :  { %3152 = vmax.xlane.f32.xlu0 %v3151_v8 }
0x1b0f   :  { %v3153_v13 = vpop.xlane.xlu0 %3152 }
0x1b10   :  { %vm3154_vm10 = vcmp.ge.f32.partialorder %v3147_v24, %v3153_v13 }
0x1b11   :  { %v3155_v14 = vsel %vm3154_vm10, %v3149_v27, 2 }
0x1b12   :  { %v3156_v18 = vsel %vm3150_vm9, %v3155_v14, 2147483647 }
0x1b13   :  { %v3158_v15 = vshra.s32 %v3156_v18, 16  ;;  %v3157_v16 = vand.u32 65535, %v3156_v18 }
0x1b15   :  { %v3160_v5 = vcvt.s32.f32 %v3158_v15  ;;  %v3159_v17 = vcvt.s32.f32 %v3157_v16 }
0x1b17   :  { %3161 = vmin.xlane.f32.xlu1 %v3160_v5 }
0x1ba4   :  { %v3162_v21 = vpop.xlane.xlu1 %3161 }
0x1ba5   :  { %vm3163_vm11 = vcmp.eq.f32.partialorder %v3160_v5, %v3162_v21  ;;  %v3168_v12 = vcvt.f32.s32 %v3162_v21 }
0x1ba6   :  { %v3164_v19 = vsel %vm3163_vm11, %v3159_v17, inf }
0x1ba7   :  { %3165 = vmin.xlane.f32.xlu0 %v3164_v19  ;;  %v3169_v49 = vshll.u32 %v3168_v12, 16 }
0x1c34   :  { %v3166_v20 = vpop.xlane.xlu0 %3165 }
0x1c35   :  { %v3167_v22 = vcvt.f32.s32 %v3166_v20 }
0x1c37   :  { %v3170_v23 = vadd.s32 %v3169_v49, %v3167_v22 }
0x1c39   :  { %v3171_v39 = vcvt.s32.f32 %v3170_v23 }
0x1c3b   :  { %v3173_v25 = vsel %vm182_vm1, %v3069_v54, %v3171_v39 }
0x1c3c   :  { %v3175_v26 = vsel %vm3174_vm12, %v3173_v25, 0.0 }
0x1c3d   :  { %3176 = vst [vmem:[%s4296_s7] sm:$0x3] %v3175_v26 }

</bundles_post_ra>
